<compile_context>
chip_gen: v7x
topology: tpu7x:2x2x1
jax: 0.10.0
libtpu: 0.0.40
codegen_flags: <defaults>
</compile_context>

<pallas_src>
import functools
import math

import jax
import jax.numpy as jnp
from jax.experimental import pallas as pl
from jax.experimental.pallas import tpu as pltpu


_VMEM_LIMIT_BYTES = 32 * 1024 * 1024   # safe on v5e/v6e (128 MiB) and v7x (64 MiB)


def _round_up(x, m):
    return (x + m - 1) // m * m


def _out_hw(n):
    # Conv2d(k=3, s=2, p=1) output extent.
    return (n - 1) // 2 + 1


def _flat_dims(ho, wo):
    """Per-image flat geometry.

    Outputs are computed on a (ho, wo+1) grid flattened row-major to `mout`
    columns so that every 3x3 tap of the stride-2 conv is a constant lane
    shift of the space-to-depth phase layout.  The extra (wo-th) column of
    each row is junk: masked out of the BN statistics in-kernel and sliced
    off in the epilogue.
    """
    mout = ho * (wo + 1)
    wout = _round_up(mout, 128)            # output flat width (lane dense)
    win = wout + _round_up(wo + 2, 128)    # input flat width incl. shift halo
    return mout, wout, win


def _taps_by_phase(wo):
    """Map the 9 conv taps onto (space-to-depth phase, constant flat shift)."""
    taps = [[] for _ in range(4)]
    for kh in range(3):
        for kw in range(3):
            t = kh * 3 + kw                        # weight tap index
            p = (kh % 2) * 2 + (kw % 2)            # phase index (ph, pw)
            d = (kh // 2) * (wo + 1) + (kw // 2)   # flat lane shift
            taps[p].append((t, d))
    return taps


# ----------------------------- Pallas kernel -------------------------------

def _conv_taps_stats_kernel(x_ref, w_ref, mask_ref, scale_ref, shift_ref,
                            y_ref, sum_ref, ssq_ref, *,
                            taps, wout, apply_input_act, mxu_dtype):
    """Fused conv stage for one image (grid axis = batch, 'parallel').

    x_ref:     (1, 4, Cin, Win)  space-to-depth flattened padded input
    w_ref:     (9, C, Cin)       per-tap conv weights
    mask_ref:  (1, Wout)         1.0 on valid output columns, 0.0 on junk
    scale_ref: (Cin, 1)          previous-stage folded BN scale  (prologue)
    shift_ref: (Cin, 1)          previous-stage folded BN shift  (prologue)
    y_ref:     (1, C, Wout)      raw conv output (f32, lane-dense store)
    sum_ref:   (1, C, 1)         per-image BN partial sum
    ssq_ref:   (1, C, 1)         per-image BN partial sum of squares
    """
    y_ref[...] = jnp.zeros_like(y_ref)
    for p in range(4):
        x_p = x_ref[0, p]                                   # (Cin, Win)
        if apply_input_act:
            # Fused stage-1 BN scale/shift + exact GELU prologue (f32 math).
            xf = x_p.astype(jnp.float32)
            xf = xf * scale_ref[...] + shift_ref[...]
            xf = 0.5 * xf * (1.0 + jax.lax.erf(xf * 0.7071067811865475))
            x_p = xf.astype(mxu_dtype)
        else:
            x_p = x_p.astype(mxu_dtype)
        for t, d in taps[p]:
            w_t = w_ref[t].astype(mxu_dtype)                # (C, Cin)
            # Tap = constant lane shift of the phase; 9 small MXU matmuls
            # accumulate directly into the output VMEM block.
            y_ref[0] += jnp.dot(w_t, x_p[:, d:d + wout],
                                preferred_element_type=jnp.float32)
    # Batch-stat BN partials (conv bias omitted: it cancels under batch BN).
    y = y_ref[0]                                            # (C, Wout) f32
    ym = y * mask_ref[...]                                  # drop junk columns
    sum_ref[0] = jnp.sum(ym, axis=1, keepdims=True)
    ssq_ref[0] = jnp.sum(ym * y, axis=1, keepdims=True)


# --------------------------- per-stage wrapper -----------------------------

def _conv_stage(xp_flat, w_taps, colmask, in_scale, in_shift, gamma, beta,
                *, wo, wout, n_valid, apply_input_act,
                mxu_dtype=jnp.float32, eps=1e-5):
    """One [optional BN+GELU prologue ->] Conv(k=3,s=2,p=1) -> BN-fold stage.

    xp_flat: (N, 4, Cin, Win) phase-flattened padded input (operand dtype).
    w_taps:  (9, C, Cin)      per-tap weights (operand dtype).
    Returns (raw conv output (N, C, Wout) f32, folded BN scale (C,), shift (C,)).
    """
    N, _, cin, win = xp_flat.shape
    C = w_taps.shape[1]
    taps = _taps_by_phase(wo)

    kern = functools.partial(
        _conv_taps_stats_kernel, taps=taps, wout=wout,
        apply_input_act=apply_input_act, mxu_dtype=mxu_dtype)

    y, s, q = pl.pallas_call(
        kern,
        grid=(N,),
        in_specs=[
            pl.BlockSpec((1, 4, cin, win), lambda n: (n, 0, 0, 0)),
            pl.BlockSpec((9, C, cin), lambda n: (0, 0, 0)),
            pl.BlockSpec((1, wout), lambda n: (0, 0)),
            pl.BlockSpec((cin, 1), lambda n: (0, 0)),
            pl.BlockSpec((cin, 1), lambda n: (0, 0)),
        ],
        out_specs=(
            pl.BlockSpec((1, C, wout), lambda n: (n, 0, 0)),
            pl.BlockSpec((1, C, 1), lambda n: (n, 0, 0)),
            pl.BlockSpec((1, C, 1), lambda n: (n, 0, 0)),
        ),
        out_shape=(jax.ShapeDtypeStruct((N, C, wout), jnp.float32),
                   jax.ShapeDtypeStruct((N, C, 1), jnp.float32),
                   jax.ShapeDtypeStruct((N, C, 1), jnp.float32)),
        compiler_params=pltpu.CompilerParams(
            dimension_semantics=("parallel",),        # per-image partials:
            vmem_limit_bytes=_VMEM_LIMIT_BYTES),      # 2-TC shardable on v7x
    )(xp_flat, w_taps, colmask, in_scale, in_shift)

    # Fold batch-stat BN into a single scale/shift (tiny, plain JAX).
    # Note: E[y^2]-E[y]^2 in f32; per-image partials limit the magnitude of
    # the sums, acceptable at these scales (Welford combine if it tightens).
    total = jnp.sum(s[:, :, 0], axis=0)
    totsq = jnp.sum(q[:, :, 0], axis=0)
    mean = total / n_valid
    var = jnp.maximum(totsq / n_valid - mean * mean, 0.0)
    scale = gamma * jax.lax.rsqrt(var + eps)
    shift = beta - scale * mean
    return y, scale, shift


# ------------------------------ JAX glue -----------------------------------

def _make_canvas(x_sp, pad_val, ho_out, wo_out):
    """Embed x_sp (N, C, H, W) at offset (1, 1) of a (2*(ho_out+1),
    2*(wo_out+1)) canvas filled with the per-channel border value pad_val."""
    N, C = x_sp.shape[:2]
    hc, wc = 2 * (ho_out + 1), 2 * (wo_out + 1)
    canvas = jnp.broadcast_to(pad_val.reshape(1, C, 1, 1),
                              (N, C, hc, wc)).astype(x_sp.dtype)
    return jax.lax.dynamic_update_slice(canvas, x_sp, (0, 0, 1, 1))


def _space_to_depth_flat(canvas, ho, wo, win):
    """(N, C, 2*(ho+1), 2*(wo+1)) -> (N, 4, C, Win): the 4 stride-2 phases,
    each flattened row-major to (ho+1)*(wo+1) lanes, zero-padded to Win."""
    N, C = canvas.shape[:2]
    ph = canvas.reshape(N, C, ho + 1, 2, wo + 1, 2)
    ph = jnp.transpose(ph, (0, 3, 5, 1, 2, 4))          # (N, 2, 2, C, ho+1, wo+1)
    flat = ph.reshape(N, 4, C, (ho + 1) * (wo + 1))
    return jnp.pad(flat, ((0, 0), (0, 0), (0, 0), (0, win - flat.shape[-1])))


def _col_mask(ho, wo, wout):
    """1.0 on valid flattened output columns (wo per row of width wo+1)."""
    j = jnp.arange(wout)
    valid = (j < ho * (wo + 1)) & ((j % (wo + 1)) != wo)
    return valid.astype(jnp.float32).reshape(1, wout)


def stack_conv_patch_embed(x_nchw, params, *, mxu_dtype=jnp.float32):
    """Forward pass of StackConvPatchEmbed.  Input NCHW, output (NCHW, size).

    Conv biases b1/b2 cancel exactly under batch-statistic BN and are not used.
    Set mxu_dtype=jnp.bfloat16 on v6e/v7x (optionally v5e) to store the conv
    operands in HBM as bf16 (cast happens before pallas_call), halving the
    dominant DMA stream; accumulation and BN/GELU math stay f32.
    """
    N, cin, H, W = x_nchw.shape
    c1 = params["w1"].shape[-1]
    c2 = params["w2"].shape[-1]
    ho1, wo1 = _out_hw(H), _out_hw(W)
    ho2, wo2 = _out_hw(ho1), _out_hw(wo1)

    # ---- Stage 1: Conv -> BN stats (GELU/BN-apply deferred to stage 2).
    mout1, wout1, win1 = _flat_dims(ho1, wo1)
    canvas1 = _make_canvas(x_nchw, jnp.zeros((cin,), x_nchw.dtype), ho1, wo1)
    x1 = _space_to_depth_flat(canvas1, ho1, wo1, win1).astype(mxu_dtype)
    w1 = jnp.transpose(params["w1"], (0, 1, 3, 2)).reshape(9, c1, cin)
    w1 = w1.astype(mxu_dtype)
    y1, scale1, shift1 = _conv_stage(
        x1, w1, _col_mask(ho1, wo1, wout1),
        jnp.ones((cin, 1), jnp.float32), jnp.zeros((cin, 1), jnp.float32),
        params["g1"], params["beta1"],
        wo=wo1, wout=wout1, n_valid=N * ho1 * wo1,
        apply_input_act=False, mxu_dtype=mxu_dtype)

    # ---- Stage boundary: raw Y1 -> spatial; pad with -shift/scale so the
    # BN1+GELU prologue inside the stage-2 kernel maps padding to exactly 0.
    y1_sp = y1[:, :, :mout1].reshape(N, c1, ho1, wo1 + 1)[:, :, :, :wo1]
    pad1 = -shift1 / scale1
    mout2, wout2, win2 = _flat_dims(ho2, wo2)
    canvas2 = _make_canvas(y1_sp, pad1, ho2, wo2)
    x2 = _space_to_depth_flat(canvas2, ho2, wo2, win2).astype(mxu_dtype)
    w2 = jnp.transpose(params["w2"], (0, 1, 3, 2)).reshape(9, c2, c1)
    w2 = w2.astype(mxu_dtype)

    # ---- Stage 2: [BN1 + GELU prologue] -> Conv -> BN stats.
    y2, scale2, shift2 = _conv_stage(
        x2, w2, _col_mask(ho2, wo2, wout2),
        scale1.reshape(c1, 1), shift1.reshape(c1, 1),
        params["g2"], params["beta2"],
        wo=wo2, wout=wout2, n_valid=N * ho2 * wo2,
        apply_input_act=True, mxu_dtype=mxu_dtype)

    # ---- Final BN2 apply fused (by XLA) into the NCHW re-layout epilogue.
    y2_sp = y2[:, :, :mout2].reshape(N, c2, ho2, wo2 + 1)[:, :, :, :wo2]
    out = y2_sp * scale2.reshape(1, c2, 1, 1) + shift2.reshape(1, c2, 1, 1)
    return out, (ho2, wo2)


# --------------------------- pure-JAX reference -----------------------------

def _reference(x_nchw, params, eps=1e-5):
    x = jnp.transpose(x_nchw, (0, 2, 3, 1))

    def conv(x, w, b):
        y = jax.lax.conv_general_dilated(
            x, w, window_strides=(2, 2), padding=((1, 1), (1, 1)),
            dimension_numbers=("NHWC", "HWIO", "NHWC"))
        return y + b

    def bn(y, g, beta):
        mu = jnp.mean(y, axis=(0, 1, 2), keepdims=True)
        var = jnp.mean((y - mu) ** 2, axis=(0, 1, 2), keepdims=True)
        return g * (y - mu) * jax.lax.rsqrt(var + eps) + beta

    y = conv(x, params["w1"], params["b1"])
    y = bn(y, params["g1"], params["beta1"])
    y = 0.5 * y * (1.0 + jax.lax.erf(y / math.sqrt(2.0)))
    y = conv(y, params["w2"], params["b2"])
    y = bn(y, params["g2"], params["beta2"])
    return jnp.transpose(y, (0, 3, 1, 2)), (y.shape[1], y.shape[2])


# --------------------------------- main -------------------------------------

if __name__ == "__main__":
    key = jax.random.PRNGKey(0)
    N, Cin, H, W = 2, 4, 16, 16
    embed_dims = 32
    c_mid, c_out = embed_dims // 2, embed_dims

    ks = jax.random.split(key, 9)
    x = jax.random.normal(ks[0], (N, Cin, H, W), jnp.float32)

    # Deterministic synthetic parameters (shapes follow the module __init__).
    # Conv weights stored HWIO: (kh, kw, Cin, Cout).
    params = {
        "w1": 0.1 * jax.random.normal(ks[1], (3, 3, Cin, c_mid), jnp.float32),
        "b1": 0.05 * jax.random.normal(ks[2], (c_mid,), jnp.float32),
        "g1": 1.0 + 0.1 * jax.random.normal(ks[3], (c_mid,), jnp.float32),
        "beta1": 0.1 * jax.random.normal(ks[4], (c_mid,), jnp.float32),
        "w2": 0.1 * jax.random.normal(ks[5], (3, 3, c_mid, c_out), jnp.float32),
        "b2": 0.05 * jax.random.normal(ks[6], (c_out,), jnp.float32),
        "g2": 1.0 + 0.1 * jax.random.normal(ks[7], (c_out,), jnp.float32),
        "beta2": 0.1 * jax.random.normal(ks[8], (c_out,), jnp.float32),
    }

    out, out_size = jax.jit(stack_conv_patch_embed)(x, params)
    out = jax.block_until_ready(out)
    out_size = (int(out_size[0]), int(out_size[1]))

    ref, ref_size = _reference(x, params)
    assert out.shape == (N, c_out, H // 4, W // 4), out.shape
    assert out_size == (H // 4, W // 4) and tuple(ref_size) == out_size
    assert jnp.allclose(out, ref, atol=1e-3, rtol=1e-3), float(
        jnp.max(jnp.abs(out - ref)))

    print("KERNEL_OK")
</pallas_src>

<mosaic_0001>
module attributes {stable_mosaic.version = 11 : i64} {
  func.func @_conv_taps_stats_kernel(%arg0: i32, %arg1: memref<1x4x4x256xf32, #tpu.memory_space<vmem>>, %arg2: memref<9x16x4xf32, #tpu.memory_space<vmem>>, %arg3: memref<1x128xf32, #tpu.memory_space<vmem>>, %arg4: memref<4x1xf32, #tpu.memory_space<vmem>>, %arg5: memref<4x1xf32, #tpu.memory_space<vmem>>, %arg6: memref<1x16x128xf32, #tpu.memory_space<vmem>>, %arg7: memref<1x16x1xf32, #tpu.memory_space<vmem>>, %arg8: memref<1x16x1xf32, #tpu.memory_space<vmem>>) attributes {dimension_semantics = [#tpu.dimension_semantics<parallel>], iteration_bounds = array<i64: 2>, scalar_prefetch = 0 : i64, scratch_operands = 0 : i64, tpu.core_type = #tpu.core_type<tc>, window_params = [{transform_indices = @transform_0, window_bounds = array<i64: 1, 4, 4, 256>}, {pipeline_mode = #tpu.pipeline_mode<synchronous>, transform_indices = @transform_1, window_bounds = array<i64: 9, 16, 4>}, {pipeline_mode = #tpu.pipeline_mode<synchronous>, transform_indices = @transform_2, window_bounds = array<i64: 1, 128>}, {pipeline_mode = #tpu.pipeline_mode<synchronous>, transform_indices = @transform_3, window_bounds = array<i64: 4, 1>}, {pipeline_mode = #tpu.pipeline_mode<synchronous>, transform_indices = @transform_4, window_bounds = array<i64: 4, 1>}, {transform_indices = @transform_5, window_bounds = array<i64: 1, 16, 128>}, {transform_indices = @transform_6, window_bounds = array<i64: 1, 16, 1>}, {transform_indices = @transform_7, window_bounds = array<i64: 1, 16, 1>}]} {
    %cst = arith.constant 0.000000e+00 : f32
    %0 = vector.broadcast %cst : f32 to vector<1x16x128xf32>
    %c0 = arith.constant 0 : index
    %c0_0 = arith.constant 0 : index
    %c0_1 = arith.constant 0 : index
    %1 = vector.load %arg6[%c0, %c0_0, %c0_1] : memref<1x16x128xf32, #tpu.memory_space<vmem>>, vector<1x16x128xf32>
    tpu.vector_store %arg6[%c0, %c0_0, %c0_1], %0 {strides = array<i32>} : memref<1x16x128xf32, #tpu.memory_space<vmem>>, vector<1x16x128xf32>,
    %c0_2 = arith.constant 0 : index
    %c0_3 = arith.constant 0 : index
    %c0_4 = arith.constant 0 : index
    %c0_5 = arith.constant 0 : index
    %2 = vector.load %arg1[%c0_2, %c0_3, %c0_4, %c0_5] : memref<1x4x4x256xf32, #tpu.memory_space<vmem>>, vector<1x1x4x256xf32>
    %3 = vector.shape_cast %2 : vector<1x1x4x256xf32> to vector<4x256xf32>
    %c0_6 = arith.constant 0 : index
    %c0_7 = arith.constant 0 : index
    %c0_8 = arith.constant 0 : index
    %4 = vector.load %arg2[%c0_6, %c0_7, %c0_8] : memref<9x16x4xf32, #tpu.memory_space<vmem>>, vector<1x16x4xf32>
    %5 = vector.shape_cast %4 : vector<1x16x4xf32> to vector<16x4xf32>
    %c0_9 = arith.constant 0 : index
    %c0_10 = arith.constant 0 : index
    %c0_11 = arith.constant 0 : index
    %6 = vector.load %arg6[%c0_9, %c0_10, %c0_11] : memref<1x16x128xf32, #tpu.memory_space<vmem>>, vector<1x16x128xf32>
    %7 = vector.shape_cast %6 : vector<1x16x128xf32> to vector<16x128xf32>
    %8 = vector.extract_strided_slice %3 {offsets = [0, 0], sizes = [4, 128], strides = [1, 1]} : vector<4x256xf32> to vector<4x128xf32>
    %cst_12 = arith.constant dense<0.000000e+00> : vector<16x128xf32>
    %9 = tpu.matmul %5, %8, %cst_12 {dimension_numbers = #tpu.dot_dimension_numbers<[1], [0], [0], [1], [0, 0, 1, 1], [], []>} : vector<16x4xf32>, vector<4x128xf32>, vector<16x128xf32> -> vector<16x128xf32>
    %10 = arith.addf %7, %9 : vector<16x128xf32>
    %c0_13 = arith.constant 0 : index
    %c0_14 = arith.constant 0 : index
    %c0_15 = arith.constant 0 : index
    %11 = vector.load %arg6[%c0_13, %c0_14, %c0_15] : memref<1x16x128xf32, #tpu.memory_space<vmem>>, vector<1x16x128xf32>
    %12 = vector.shape_cast %11 : vector<1x16x128xf32> to vector<16x128xf32>
    %13 = vector.shape_cast %10 : vector<16x128xf32> to vector<1x16x128xf32>
    tpu.vector_store %arg6[%c0_13, %c0_14, %c0_15], %13 {strides = array<i32>} : memref<1x16x128xf32, #tpu.memory_space<vmem>>, vector<1x16x128xf32>,
    %c2 = arith.constant 2 : index
    %c0_16 = arith.constant 0 : index
    %c0_17 = arith.constant 0 : index
    %14 = vector.load %arg2[%c2, %c0_16, %c0_17] : memref<9x16x4xf32, #tpu.memory_space<vmem>>, vector<1x16x4xf32>
    %15 = vector.shape_cast %14 : vector<1x16x4xf32> to vector<16x4xf32>
    %c0_18 = arith.constant 0 : index
    %c0_19 = arith.constant 0 : index
    %c0_20 = arith.constant 0 : index
    %16 = vector.load %arg6[%c0_18, %c0_19, %c0_20] : memref<1x16x128xf32, #tpu.memory_space<vmem>>, vector<1x16x128xf32>
    %17 = vector.shape_cast %16 : vector<1x16x128xf32> to vector<16x128xf32>
    %18 = vector.extract_strided_slice %3 {offsets = [0, 1], sizes = [4, 128], strides = [1, 1]} : vector<4x256xf32> to vector<4x128xf32>
    %cst_21 = arith.constant dense<0.000000e+00> : vector<16x128xf32>
    %19 = tpu.matmul %15, %18, %cst_21 {dimension_numbers = #tpu.dot_dimension_numbers<[1], [0], [0], [1], [0, 0, 1, 1], [], []>} : vector<16x4xf32>, vector<4x128xf32>, vector<16x128xf32> -> vector<16x128xf32>
    %20 = arith.addf %17, %19 : vector<16x128xf32>
    %c0_22 = arith.constant 0 : index
    %c0_23 = arith.constant 0 : index
    %c0_24 = arith.constant 0 : index
    %21 = vector.load %arg6[%c0_22, %c0_23, %c0_24] : memref<1x16x128xf32, #tpu.memory_space<vmem>>, vector<1x16x128xf32>
    %22 = vector.shape_cast %21 : vector<1x16x128xf32> to vector<16x128xf32>
    %23 = vector.shape_cast %20 : vector<16x128xf32> to vector<1x16x128xf32>
    tpu.vector_store %arg6[%c0_22, %c0_23, %c0_24], %23 {strides = array<i32>} : memref<1x16x128xf32, #tpu.memory_space<vmem>>, vector<1x16x128xf32>,
    %c6 = arith.constant 6 : index
    %c0_25 = arith.constant 0 : index
    %c0_26 = arith.constant 0 : index
    %24 = vector.load %arg2[%c6, %c0_25, %c0_26] : memref<9x16x4xf32, #tpu.memory_space<vmem>>, vector<1x16x4xf32>
    %25 = vector.shape_cast %24 : vector<1x16x4xf32> to vector<16x4xf32>
    %c0_27 = arith.constant 0 : index
    %c0_28 = arith.constant 0 : index
    %c0_29 = arith.constant 0 : index
    %26 = vector.load %arg6[%c0_27, %c0_28, %c0_29] : memref<1x16x128xf32, #tpu.memory_space<vmem>>, vector<1x16x128xf32>
    %27 = vector.shape_cast %26 : vector<1x16x128xf32> to vector<16x128xf32>
    %28 = vector.extract_strided_slice %3 {offsets = [0, 9], sizes = [4, 128], strides = [1, 1]} : vector<4x256xf32> to vector<4x128xf32>
    %cst_30 = arith.constant dense<0.000000e+00> : vector<16x128xf32>
    %29 = tpu.matmul %25, %28, %cst_30 {dimension_numbers = #tpu.dot_dimension_numbers<[1], [0], [0], [1], [0, 0, 1, 1], [], []>} : vector<16x4xf32>, vector<4x128xf32>, vector<16x128xf32> -> vector<16x128xf32>
    %30 = arith.addf %27, %29 : vector<16x128xf32>
    %c0_31 = arith.constant 0 : index
    %c0_32 = arith.constant 0 : index
    %c0_33 = arith.constant 0 : index
    %31 = vector.load %arg6[%c0_31, %c0_32, %c0_33] : memref<1x16x128xf32, #tpu.memory_space<vmem>>, vector<1x16x128xf32>
    %32 = vector.shape_cast %31 : vector<1x16x128xf32> to vector<16x128xf32>
    %33 = vector.shape_cast %30 : vector<16x128xf32> to vector<1x16x128xf32>
    tpu.vector_store %arg6[%c0_31, %c0_32, %c0_33], %33 {strides = array<i32>} : memref<1x16x128xf32, #tpu.memory_space<vmem>>, vector<1x16x128xf32>,
    %c8 = arith.constant 8 : index
    %c0_34 = arith.constant 0 : index
    %c0_35 = arith.constant 0 : index
    %34 = vector.load %arg2[%c8, %c0_34, %c0_35] : memref<9x16x4xf32, #tpu.memory_space<vmem>>, vector<1x16x4xf32>
    %35 = vector.shape_cast %34 : vector<1x16x4xf32> to vector<16x4xf32>
    %c0_36 = arith.constant 0 : index
    %c0_37 = arith.constant 0 : index
    %c0_38 = arith.constant 0 : index
    %36 = vector.load %arg6[%c0_36, %c0_37, %c0_38] : memref<1x16x128xf32, #tpu.memory_space<vmem>>, vector<1x16x128xf32>
    %37 = vector.shape_cast %36 : vector<1x16x128xf32> to vector<16x128xf32>
    %38 = vector.extract_strided_slice %3 {offsets = [0, 10], sizes = [4, 128], strides = [1, 1]} : vector<4x256xf32> to vector<4x128xf32>
    %cst_39 = arith.constant dense<0.000000e+00> : vector<16x128xf32>
    %39 = tpu.matmul %35, %38, %cst_39 {dimension_numbers = #tpu.dot_dimension_numbers<[1], [0], [0], [1], [0, 0, 1, 1], [], []>} : vector<16x4xf32>, vector<4x128xf32>, vector<16x128xf32> -> vector<16x128xf32>
    %40 = arith.addf %37, %39 : vector<16x128xf32>
    %c0_40 = arith.constant 0 : index
    %c0_41 = arith.constant 0 : index
    %c0_42 = arith.constant 0 : index
    %41 = vector.load %arg6[%c0_40, %c0_41, %c0_42] : memref<1x16x128xf32, #tpu.memory_space<vmem>>, vector<1x16x128xf32>
    %42 = vector.shape_cast %41 : vector<1x16x128xf32> to vector<16x128xf32>
    %43 = vector.shape_cast %40 : vector<16x128xf32> to vector<1x16x128xf32>
    tpu.vector_store %arg6[%c0_40, %c0_41, %c0_42], %43 {strides = array<i32>} : memref<1x16x128xf32, #tpu.memory_space<vmem>>, vector<1x16x128xf32>,
    %c0_43 = arith.constant 0 : index
    %c1 = arith.constant 1 : index
    %c0_44 = arith.constant 0 : index
    %c0_45 = arith.constant 0 : index
    %44 = vector.load %arg1[%c0_43, %c1, %c0_44, %c0_45] : memref<1x4x4x256xf32, #tpu.memory_space<vmem>>, vector<1x1x4x256xf32>
    %45 = vector.shape_cast %44 : vector<1x1x4x256xf32> to vector<4x256xf32>
    %c1_46 = arith.constant 1 : index
    %c0_47 = arith.constant 0 : index
    %c0_48 = arith.constant 0 : index
    %46 = vector.load %arg2[%c1_46, %c0_47, %c0_48] : memref<9x16x4xf32, #tpu.memory_space<vmem>>, vector<1x16x4xf32>
    %47 = vector.shape_cast %46 : vector<1x16x4xf32> to vector<16x4xf32>
    %c0_49 = arith.constant 0 : index
    %c0_50 = arith.constant 0 : index
    %c0_51 = arith.constant 0 : index
    %48 = vector.load %arg6[%c0_49, %c0_50, %c0_51] : memref<1x16x128xf32, #tpu.memory_space<vmem>>, vector<1x16x128xf32>
    %49 = vector.shape_cast %48 : vector<1x16x128xf32> to vector<16x128xf32>
    %50 = vector.extract_strided_slice %45 {offsets = [0, 0], sizes = [4, 128], strides = [1, 1]} : vector<4x256xf32> to vector<4x128xf32>
    %cst_52 = arith.constant dense<0.000000e+00> : vector<16x128xf32>
    %51 = tpu.matmul %47, %50, %cst_52 {dimension_numbers = #tpu.dot_dimension_numbers<[1], [0], [0], [1], [0, 0, 1, 1], [], []>} : vector<16x4xf32>, vector<4x128xf32>, vector<16x128xf32> -> vector<16x128xf32>
    %52 = arith.addf %49, %51 : vector<16x128xf32>
    %c0_53 = arith.constant 0 : index
    %c0_54 = arith.constant 0 : index
    %c0_55 = arith.constant 0 : index
    %53 = vector.load %arg6[%c0_53, %c0_54, %c0_55] : memref<1x16x128xf32, #tpu.memory_space<vmem>>, vector<1x16x128xf32>
    %54 = vector.shape_cast %53 : vector<1x16x128xf32> to vector<16x128xf32>
    %55 = vector.shape_cast %52 : vector<16x128xf32> to vector<1x16x128xf32>
    tpu.vector_store %arg6[%c0_53, %c0_54, %c0_55], %55 {strides = array<i32>} : memref<1x16x128xf32, #tpu.memory_space<vmem>>, vector<1x16x128xf32>,
    %c7 = arith.constant 7 : index
    %c0_56 = arith.constant 0 : index
    %c0_57 = arith.constant 0 : index
    %56 = vector.load %arg2[%c7, %c0_56, %c0_57] : memref<9x16x4xf32, #tpu.memory_space<vmem>>, vector<1x16x4xf32>
    %57 = vector.shape_cast %56 : vector<1x16x4xf32> to vector<16x4xf32>
    %c0_58 = arith.constant 0 : index
    %c0_59 = arith.constant 0 : index
    %c0_60 = arith.constant 0 : index
    %58 = vector.load %arg6[%c0_58, %c0_59, %c0_60] : memref<1x16x128xf32, #tpu.memory_space<vmem>>, vector<1x16x128xf32>
    %59 = vector.shape_cast %58 : vector<1x16x128xf32> to vector<16x128xf32>
    %60 = vector.extract_strided_slice %45 {offsets = [0, 9], sizes = [4, 128], strides = [1, 1]} : vector<4x256xf32> to vector<4x128xf32>
    %cst_61 = arith.constant dense<0.000000e+00> : vector<16x128xf32>
    %61 = tpu.matmul %57, %60, %cst_61 {dimension_numbers = #tpu.dot_dimension_numbers<[1], [0], [0], [1], [0, 0, 1, 1], [], []>} : vector<16x4xf32>, vector<4x128xf32>, vector<16x128xf32> -> vector<16x128xf32>
    %62 = arith.addf %59, %61 : vector<16x128xf32>
    %c0_62 = arith.constant 0 : index
    %c0_63 = arith.constant 0 : index
    %c0_64 = arith.constant 0 : index
    %63 = vector.load %arg6[%c0_62, %c0_63, %c0_64] : memref<1x16x128xf32, #tpu.memory_space<vmem>>, vector<1x16x128xf32>
    %64 = vector.shape_cast %63 : vector<1x16x128xf32> to vector<16x128xf32>
    %65 = vector.shape_cast %62 : vector<16x128xf32> to vector<1x16x128xf32>
    tpu.vector_store %arg6[%c0_62, %c0_63, %c0_64], %65 {strides = array<i32>} : memref<1x16x128xf32, #tpu.memory_space<vmem>>, vector<1x16x128xf32>,
    %c0_65 = arith.constant 0 : index
    %c2_66 = arith.constant 2 : index
    %c0_67 = arith.constant 0 : index
    %c0_68 = arith.constant 0 : index
    %66 = vector.load %arg1[%c0_65, %c2_66, %c0_67, %c0_68] : memref<1x4x4x256xf32, #tpu.memory_space<vmem>>, vector<1x1x4x256xf32>
    %67 = vector.shape_cast %66 : vector<1x1x4x256xf32> to vector<4x256xf32>
    %c3 = arith.constant 3 : index
    %c0_69 = arith.constant 0 : index
    %c0_70 = arith.constant 0 : index
    %68 = vector.load %arg2[%c3, %c0_69, %c0_70] : memref<9x16x4xf32, #tpu.memory_space<vmem>>, vector<1x16x4xf32>
    %69 = vector.shape_cast %68 : vector<1x16x4xf32> to vector<16x4xf32>
    %c0_71 = arith.constant 0 : index
    %c0_72 = arith.constant 0 : index
    %c0_73 = arith.constant 0 : index
    %70 = vector.load %arg6[%c0_71, %c0_72, %c0_73] : memref<1x16x128xf32, #tpu.memory_space<vmem>>, vector<1x16x128xf32>
    %71 = vector.shape_cast %70 : vector<1x16x128xf32> to vector<16x128xf32>
    %72 = vector.extract_strided_slice %67 {offsets = [0, 0], sizes = [4, 128], strides = [1, 1]} : vector<4x256xf32> to vector<4x128xf32>
    %cst_74 = arith.constant dense<0.000000e+00> : vector<16x128xf32>
    %73 = tpu.matmul %69, %72, %cst_74 {dimension_numbers = #tpu.dot_dimension_numbers<[1], [0], [0], [1], [0, 0, 1, 1], [], []>} : vector<16x4xf32>, vector<4x128xf32>, vector<16x128xf32> -> vector<16x128xf32>
    %74 = arith.addf %71, %73 : vector<16x128xf32>
    %c0_75 = arith.constant 0 : index
    %c0_76 = arith.constant 0 : index
    %c0_77 = arith.constant 0 : index
    %75 = vector.load %arg6[%c0_75, %c0_76, %c0_77] : memref<1x16x128xf32, #tpu.memory_space<vmem>>, vector<1x16x128xf32>
    %76 = vector.shape_cast %75 : vector<1x16x128xf32> to vector<16x128xf32>
    %77 = vector.shape_cast %74 : vector<16x128xf32> to vector<1x16x128xf32>
    tpu.vector_store %arg6[%c0_75, %c0_76, %c0_77], %77 {strides = array<i32>} : memref<1x16x128xf32, #tpu.memory_space<vmem>>, vector<1x16x128xf32>,
    %c5 = arith.constant 5 : index
    %c0_78 = arith.constant 0 : index
    %c0_79 = arith.constant 0 : index
    %78 = vector.load %arg2[%c5, %c0_78, %c0_79] : memref<9x16x4xf32, #tpu.memory_space<vmem>>, vector<1x16x4xf32>
    %79 = vector.shape_cast %78 : vector<1x16x4xf32> to vector<16x4xf32>
    %c0_80 = arith.constant 0 : index
    %c0_81 = arith.constant 0 : index
    %c0_82 = arith.constant 0 : index
    %80 = vector.load %arg6[%c0_80, %c0_81, %c0_82] : memref<1x16x128xf32, #tpu.memory_space<vmem>>, vector<1x16x128xf32>
    %81 = vector.shape_cast %80 : vector<1x16x128xf32> to vector<16x128xf32>
    %82 = vector.extract_strided_slice %67 {offsets = [0, 1], sizes = [4, 128], strides = [1, 1]} : vector<4x256xf32> to vector<4x128xf32>
    %cst_83 = arith.constant dense<0.000000e+00> : vector<16x128xf32>
    %83 = tpu.matmul %79, %82, %cst_83 {dimension_numbers = #tpu.dot_dimension_numbers<[1], [0], [0], [1], [0, 0, 1, 1], [], []>} : vector<16x4xf32>, vector<4x128xf32>, vector<16x128xf32> -> vector<16x128xf32>
    %84 = arith.addf %81, %83 : vector<16x128xf32>
    %c0_84 = arith.constant 0 : index
    %c0_85 = arith.constant 0 : index
    %c0_86 = arith.constant 0 : index
    %85 = vector.load %arg6[%c0_84, %c0_85, %c0_86] : memref<1x16x128xf32, #tpu.memory_space<vmem>>, vector<1x16x128xf32>
    %86 = vector.shape_cast %85 : vector<1x16x128xf32> to vector<16x128xf32>
    %87 = vector.shape_cast %84 : vector<16x128xf32> to vector<1x16x128xf32>
    tpu.vector_store %arg6[%c0_84, %c0_85, %c0_86], %87 {strides = array<i32>} : memref<1x16x128xf32, #tpu.memory_space<vmem>>, vector<1x16x128xf32>,
    %c0_87 = arith.constant 0 : index
    %c3_88 = arith.constant 3 : index
    %c0_89 = arith.constant 0 : index
    %c0_90 = arith.constant 0 : index
    %88 = vector.load %arg1[%c0_87, %c3_88, %c0_89, %c0_90] : memref<1x4x4x256xf32, #tpu.memory_space<vmem>>, vector<1x1x4x256xf32>
    %89 = vector.shape_cast %88 : vector<1x1x4x256xf32> to vector<4x256xf32>
    %c4 = arith.constant 4 : index
    %c0_91 = arith.constant 0 : index
    %c0_92 = arith.constant 0 : index
    %90 = vector.load %arg2[%c4, %c0_91, %c0_92] : memref<9x16x4xf32, #tpu.memory_space<vmem>>, vector<1x16x4xf32>
    %91 = vector.shape_cast %90 : vector<1x16x4xf32> to vector<16x4xf32>
    %c0_93 = arith.constant 0 : index
    %c0_94 = arith.constant 0 : index
    %c0_95 = arith.constant 0 : index
    %92 = vector.load %arg6[%c0_93, %c0_94, %c0_95] : memref<1x16x128xf32, #tpu.memory_space<vmem>>, vector<1x16x128xf32>
    %93 = vector.shape_cast %92 : vector<1x16x128xf32> to vector<16x128xf32>
    %94 = vector.extract_strided_slice %89 {offsets = [0, 0], sizes = [4, 128], strides = [1, 1]} : vector<4x256xf32> to vector<4x128xf32>
    %cst_96 = arith.constant dense<0.000000e+00> : vector<16x128xf32>
    %95 = tpu.matmul %91, %94, %cst_96 {dimension_numbers = #tpu.dot_dimension_numbers<[1], [0], [0], [1], [0, 0, 1, 1], [], []>} : vector<16x4xf32>, vector<4x128xf32>, vector<16x128xf32> -> vector<16x128xf32>
    %96 = arith.addf %93, %95 : vector<16x128xf32>
    %c0_97 = arith.constant 0 : index
    %c0_98 = arith.constant 0 : index
    %c0_99 = arith.constant 0 : index
    %97 = vector.load %arg6[%c0_97, %c0_98, %c0_99] : memref<1x16x128xf32, #tpu.memory_space<vmem>>, vector<1x16x128xf32>
    %98 = vector.shape_cast %97 : vector<1x16x128xf32> to vector<16x128xf32>
    %99 = vector.shape_cast %96 : vector<16x128xf32> to vector<1x16x128xf32>
    tpu.vector_store %arg6[%c0_97, %c0_98, %c0_99], %99 {strides = array<i32>} : memref<1x16x128xf32, #tpu.memory_space<vmem>>, vector<1x16x128xf32>,
    %c0_100 = arith.constant 0 : index
    %c0_101 = arith.constant 0 : index
    %c0_102 = arith.constant 0 : index
    %100 = vector.load %arg6[%c0_100, %c0_101, %c0_102] : memref<1x16x128xf32, #tpu.memory_space<vmem>>, vector<1x16x128xf32>
    %101 = vector.shape_cast %100 : vector<1x16x128xf32> to vector<16x128xf32>
    %c0_103 = arith.constant 0 : index
    %c0_104 = arith.constant 0 : index
    %102 = vector.load %arg3[%c0_103, %c0_104] : memref<1x128xf32, #tpu.memory_space<vmem>>, vector<1x128xf32>
    %103 = vector.broadcast %102 : vector<1x128xf32> to vector<16x128xf32>
    %104 = arith.mulf %101, %103 : vector<16x128xf32>
    %cst_105 = arith.constant dense<0.000000e+00> : vector<16xf32>
    %105 = vector.multi_reduction <add>, %104, %cst_105 [1] : vector<16x128xf32> to vector<16xf32>
    %106 = vector.shape_cast %105 : vector<16xf32> to vector<16x1xf32>
    %c0_106 = arith.constant 0 : index
    %c0_107 = arith.constant 0 : index
    %c0_108 = arith.constant 0 : index
    %107 = vector.load %arg7[%c0_106, %c0_107, %c0_108] : memref<1x16x1xf32, #tpu.memory_space<vmem>>, vector<1x16x1xf32>
    %108 = vector.shape_cast %107 : vector<1x16x1xf32> to vector<16x1xf32>
    %109 = vector.shape_cast %106 : vector<16x1xf32> to vector<1x16x1xf32>
    tpu.vector_store %arg7[%c0_106, %c0_107, %c0_108], %109 {strides = array<i32>} : memref<1x16x1xf32, #tpu.memory_space<vmem>>, vector<1x16x1xf32>,
    %110 = arith.mulf %104, %101 : vector<16x128xf32>
    %cst_109 = arith.constant dense<0.000000e+00> : vector<16xf32>
    %111 = vector.multi_reduction <add>, %110, %cst_109 [1] : vector<16x128xf32> to vector<16xf32>
    %112 = vector.shape_cast %111 : vector<16xf32> to vector<16x1xf32>
    %c0_110 = arith.constant 0 : index
    %c0_111 = arith.constant 0 : index
    %c0_112 = arith.constant 0 : index
    %113 = vector.load %arg8[%c0_110, %c0_111, %c0_112] : memref<1x16x1xf32, #tpu.memory_space<vmem>>, vector<1x16x1xf32>
    %114 = vector.shape_cast %113 : vector<1x16x1xf32> to vector<16x1xf32>
    %115 = vector.shape_cast %112 : vector<16x1xf32> to vector<1x16x1xf32>
    tpu.vector_store %arg8[%c0_110, %c0_111, %c0_112], %115 {strides = array<i32>} : memref<1x16x1xf32, #tpu.memory_space<vmem>>, vector<1x16x1xf32>,
    return
  }
  func.func @transform_0(%arg0: i32) -> (i32, i32, i32, i32) {
    %c0_i32 = arith.constant 0 : i32
    %c0_i32_0 = arith.constant 0 : i32
    %c0_i32_1 = arith.constant 0 : i32
    %c0_i32_2 = arith.constant 0 : i32
    return %arg0, %c0_i32, %c0_i32_0, %c0_i32_1 : i32, i32, i32, i32
  }
  func.func @transform_1(%arg0: i32) -> (i32, i32, i32) {
    %c0_i32 = arith.constant 0 : i32
    %c0_i32_0 = arith.constant 0 : i32
    %c0_i32_1 = arith.constant 0 : i32
    %c0_i32_2 = arith.constant 0 : i32
    return %c0_i32, %c0_i32_0, %c0_i32_1 : i32, i32, i32
  }
  func.func @transform_2(%arg0: i32) -> (i32, i32) {
    %c0_i32 = arith.constant 0 : i32
    %c0_i32_0 = arith.constant 0 : i32
    %c0_i32_1 = arith.constant 0 : i32
    return %c0_i32, %c0_i32_0 : i32, i32
  }
  func.func @transform_3(%arg0: i32) -> (i32, i32) {
    %c0_i32 = arith.constant 0 : i32
    %c0_i32_0 = arith.constant 0 : i32
    %c0_i32_1 = arith.constant 0 : i32
    return %c0_i32, %c0_i32_0 : i32, i32
  }
  func.func @transform_4(%arg0: i32) -> (i32, i32) {
    %c0_i32 = arith.constant 0 : i32
    %c0_i32_0 = arith.constant 0 : i32
    %c0_i32_1 = arith.constant 0 : i32
    return %c0_i32, %c0_i32_0 : i32, i32
  }
  func.func @transform_5(%arg0: i32) -> (i32, i32, i32) {
    %c0_i32 = arith.constant 0 : i32
    %c0_i32_0 = arith.constant 0 : i32
    %c0_i32_1 = arith.constant 0 : i32
    return %arg0, %c0_i32, %c0_i32_0 : i32, i32, i32
  }
  func.func @transform_6(%arg0: i32) -> (i32, i32, i32) {
    %c0_i32 = arith.constant 0 : i32
    %c0_i32_0 = arith.constant 0 : i32
    %c0_i32_1 = arith.constant 0 : i32
    return %arg0, %c0_i32, %c0_i32_0 : i32, i32, i32
  }
  func.func @transform_7(%arg0: i32) -> (i32, i32, i32) {
    %c0_i32 = arith.constant 0 : i32
    %c0_i32_0 = arith.constant 0 : i32
    %c0_i32_1 = arith.constant 0 : i32
    return %arg0, %c0_i32, %c0_i32_0 : i32, i32, i32
  }
}

module attributes {stable_mosaic.version = 11 : i64} {
  func.func @_conv_taps_stats_kernel(%arg0: i32, %arg1: memref<1x4x16x256xf32, #tpu.memory_space<vmem>>, %arg2: memref<9x32x16xf32, #tpu.memory_space<vmem>>, %arg3: memref<1x128xf32, #tpu.memory_space<vmem>>, %arg4: memref<16x1xf32, #tpu.memory_space<vmem>>, %arg5: memref<16x1xf32, #tpu.memory_space<vmem>>, %arg6: memref<1x32x128xf32, #tpu.memory_space<vmem>>, %arg7: memref<1x32x1xf32, #tpu.memory_space<vmem>>, %arg8: memref<1x32x1xf32, #tpu.memory_space<vmem>>) attributes {dimension_semantics = [#tpu.dimension_semantics<parallel>], iteration_bounds = array<i64: 2>, scalar_prefetch = 0 : i64, scratch_operands = 0 : i64, tpu.core_type = #tpu.core_type<tc>, window_params = [{transform_indices = @transform_0, window_bounds = array<i64: 1, 4, 16, 256>}, {pipeline_mode = #tpu.pipeline_mode<synchronous>, transform_indices = @transform_1, window_bounds = array<i64: 9, 32, 16>}, {pipeline_mode = #tpu.pipeline_mode<synchronous>, transform_indices = @transform_2, window_bounds = array<i64: 1, 128>}, {pipeline_mode = #tpu.pipeline_mode<synchronous>, transform_indices = @transform_3, window_bounds = array<i64: 16, 1>}, {pipeline_mode = #tpu.pipeline_mode<synchronous>, transform_indices = @transform_4, window_bounds = array<i64: 16, 1>}, {transform_indices = @transform_5, window_bounds = array<i64: 1, 32, 128>}, {transform_indices = @transform_6, window_bounds = array<i64: 1, 32, 1>}, {transform_indices = @transform_7, window_bounds = array<i64: 1, 32, 1>}]} {
    %cst = arith.constant 0.000000e+00 : f32
    %0 = vector.broadcast %cst : f32 to vector<1x32x128xf32>
    %c0 = arith.constant 0 : index
    %c0_0 = arith.constant 0 : index
    %c0_1 = arith.constant 0 : index
    %1 = vector.load %arg6[%c0, %c0_0, %c0_1] : memref<1x32x128xf32, #tpu.memory_space<vmem>>, vector<1x32x128xf32>
    tpu.vector_store %arg6[%c0, %c0_0, %c0_1], %0 {strides = array<i32>} : memref<1x32x128xf32, #tpu.memory_space<vmem>>, vector<1x32x128xf32>,
    %c0_2 = arith.constant 0 : index
    %c0_3 = arith.constant 0 : index
    %c0_4 = arith.constant 0 : index
    %c0_5 = arith.constant 0 : index
    %2 = vector.load %arg1[%c0_2, %c0_3, %c0_4, %c0_5] : memref<1x4x16x256xf32, #tpu.memory_space<vmem>>, vector<1x1x16x256xf32>
    %3 = vector.shape_cast %2 : vector<1x1x16x256xf32> to vector<16x256xf32>
    %c0_6 = arith.constant 0 : index
    %c0_7 = arith.constant 0 : index
    %4 = vector.load %arg4[%c0_6, %c0_7] : memref<16x1xf32, #tpu.memory_space<vmem>>, vector<16x1xf32>
    %5 = vector.broadcast %4 : vector<16x1xf32> to vector<16x256xf32>
    %6 = arith.mulf %3, %5 : vector<16x256xf32>
    %c0_8 = arith.constant 0 : index
    %c0_9 = arith.constant 0 : index
    %7 = vector.load %arg5[%c0_8, %c0_9] : memref<16x1xf32, #tpu.memory_space<vmem>>, vector<16x1xf32>
    %8 = vector.broadcast %7 : vector<16x1xf32> to vector<16x256xf32>
    %9 = arith.addf %6, %8 : vector<16x256xf32>
    %cst_10 = arith.constant 5.000000e-01 : f32
    %10 = vector.broadcast %cst_10 : f32 to vector<16x256xf32>
    %11 = arith.mulf %10, %9 : vector<16x256xf32>
    %cst_11 = arith.constant 0.707106769 : f32
    %12 = vector.broadcast %cst_11 : f32 to vector<16x256xf32>
    %13 = arith.mulf %9, %12 : vector<16x256xf32>
    %14 = math.erf %13 : vector<16x256xf32>
    %cst_12 = arith.constant 1.000000e+00 : f32
    %15 = vector.broadcast %cst_12 : f32 to vector<16x256xf32>
    %16 = arith.addf %15, %14 : vector<16x256xf32>
    %17 = arith.mulf %11, %16 : vector<16x256xf32>
    %c0_13 = arith.constant 0 : index
    %c0_14 = arith.constant 0 : index
    %c0_15 = arith.constant 0 : index
    %18 = vector.load %arg2[%c0_13, %c0_14, %c0_15] : memref<9x32x16xf32, #tpu.memory_space<vmem>>, vector<1x32x16xf32>
    %19 = vector.shape_cast %18 : vector<1x32x16xf32> to vector<32x16xf32>
    %c0_16 = arith.constant 0 : index
    %c0_17 = arith.constant 0 : index
    %c0_18 = arith.constant 0 : index
    %20 = vector.load %arg6[%c0_16, %c0_17, %c0_18] : memref<1x32x128xf32, #tpu.memory_space<vmem>>, vector<1x32x128xf32>
    %21 = vector.shape_cast %20 : vector<1x32x128xf32> to vector<32x128xf32>
    %22 = vector.extract_strided_slice %17 {offsets = [0, 0], sizes = [16, 128], strides = [1, 1]} : vector<16x256xf32> to vector<16x128xf32>
    %cst_19 = arith.constant dense<0.000000e+00> : vector<32x128xf32>
    %23 = tpu.matmul %19, %22, %cst_19 {dimension_numbers = #tpu.dot_dimension_numbers<[1], [0], [0], [1], [0, 0, 1, 1], [], []>} : vector<32x16xf32>, vector<16x128xf32>, vector<32x128xf32> -> vector<32x128xf32>
    %24 = arith.addf %21, %23 : vector<32x128xf32>
    %c0_20 = arith.constant 0 : index
    %c0_21 = arith.constant 0 : index
    %c0_22 = arith.constant 0 : index
    %25 = vector.load %arg6[%c0_20, %c0_21, %c0_22] : memref<1x32x128xf32, #tpu.memory_space<vmem>>, vector<1x32x128xf32>
    %26 = vector.shape_cast %25 : vector<1x32x128xf32> to vector<32x128xf32>
    %27 = vector.shape_cast %24 : vector<32x128xf32> to vector<1x32x128xf32>
    tpu.vector_store %arg6[%c0_20, %c0_21, %c0_22], %27 {strides = array<i32>} : memref<1x32x128xf32, #tpu.memory_space<vmem>>, vector<1x32x128xf32>,
    %c2 = arith.constant 2 : index
    %c0_23 = arith.constant 0 : index
    %c0_24 = arith.constant 0 : index
    %28 = vector.load %arg2[%c2, %c0_23, %c0_24] : memref<9x32x16xf32, #tpu.memory_space<vmem>>, vector<1x32x16xf32>
    %29 = vector.shape_cast %28 : vector<1x32x16xf32> to vector<32x16xf32>
    %c0_25 = arith.constant 0 : index
    %c0_26 = arith.constant 0 : index
    %c0_27 = arith.constant 0 : index
    %30 = vector.load %arg6[%c0_25, %c0_26, %c0_27] : memref<1x32x128xf32, #tpu.memory_space<vmem>>, vector<1x32x128xf32>
    %31 = vector.shape_cast %30 : vector<1x32x128xf32> to vector<32x128xf32>
    %32 = vector.extract_strided_slice %17 {offsets = [0, 1], sizes = [16, 128], strides = [1, 1]} : vector<16x256xf32> to vector<16x128xf32>
    %cst_28 = arith.constant dense<0.000000e+00> : vector<32x128xf32>
    %33 = tpu.matmul %29, %32, %cst_28 {dimension_numbers = #tpu.dot_dimension_numbers<[1], [0], [0], [1], [0, 0, 1, 1], [], []>} : vector<32x16xf32>, vector<16x128xf32>, vector<32x128xf32> -> vector<32x128xf32>
    %34 = arith.addf %31, %33 : vector<32x128xf32>
    %c0_29 = arith.constant 0 : index
    %c0_30 = arith.constant 0 : index
    %c0_31 = arith.constant 0 : index
    %35 = vector.load %arg6[%c0_29, %c0_30, %c0_31] : memref<1x32x128xf32, #tpu.memory_space<vmem>>, vector<1x32x128xf32>
    %36 = vector.shape_cast %35 : vector<1x32x128xf32> to vector<32x128xf32>
    %37 = vector.shape_cast %34 : vector<32x128xf32> to vector<1x32x128xf32>
    tpu.vector_store %arg6[%c0_29, %c0_30, %c0_31], %37 {strides = array<i32>} : memref<1x32x128xf32, #tpu.memory_space<vmem>>, vector<1x32x128xf32>,
    %c6 = arith.constant 6 : index
    %c0_32 = arith.constant 0 : index
    %c0_33 = arith.constant 0 : index
    %38 = vector.load %arg2[%c6, %c0_32, %c0_33] : memref<9x32x16xf32, #tpu.memory_space<vmem>>, vector<1x32x16xf32>
    %39 = vector.shape_cast %38 : vector<1x32x16xf32> to vector<32x16xf32>
    %c0_34 = arith.constant 0 : index
    %c0_35 = arith.constant 0 : index
    %c0_36 = arith.constant 0 : index
    %40 = vector.load %arg6[%c0_34, %c0_35, %c0_36] : memref<1x32x128xf32, #tpu.memory_space<vmem>>, vector<1x32x128xf32>
    %41 = vector.shape_cast %40 : vector<1x32x128xf32> to vector<32x128xf32>
    %42 = vector.extract_strided_slice %17 {offsets = [0, 5], sizes = [16, 128], strides = [1, 1]} : vector<16x256xf32> to vector<16x128xf32>
    %cst_37 = arith.constant dense<0.000000e+00> : vector<32x128xf32>
    %43 = tpu.matmul %39, %42, %cst_37 {dimension_numbers = #tpu.dot_dimension_numbers<[1], [0], [0], [1], [0, 0, 1, 1], [], []>} : vector<32x16xf32>, vector<16x128xf32>, vector<32x128xf32> -> vector<32x128xf32>
    %44 = arith.addf %41, %43 : vector<32x128xf32>
    %c0_38 = arith.constant 0 : index
    %c0_39 = arith.constant 0 : index
    %c0_40 = arith.constant 0 : index
    %45 = vector.load %arg6[%c0_38, %c0_39, %c0_40] : memref<1x32x128xf32, #tpu.memory_space<vmem>>, vector<1x32x128xf32>
    %46 = vector.shape_cast %45 : vector<1x32x128xf32> to vector<32x128xf32>
    %47 = vector.shape_cast %44 : vector<32x128xf32> to vector<1x32x128xf32>
    tpu.vector_store %arg6[%c0_38, %c0_39, %c0_40], %47 {strides = array<i32>} : memref<1x32x128xf32, #tpu.memory_space<vmem>>, vector<1x32x128xf32>,
    %c8 = arith.constant 8 : index
    %c0_41 = arith.constant 0 : index
    %c0_42 = arith.constant 0 : index
    %48 = vector.load %arg2[%c8, %c0_41, %c0_42] : memref<9x32x16xf32, #tpu.memory_space<vmem>>, vector<1x32x16xf32>
    %49 = vector.shape_cast %48 : vector<1x32x16xf32> to vector<32x16xf32>
    %c0_43 = arith.constant 0 : index
    %c0_44 = arith.constant 0 : index
    %c0_45 = arith.constant 0 : index
    %50 = vector.load %arg6[%c0_43, %c0_44, %c0_45] : memref<1x32x128xf32, #tpu.memory_space<vmem>>, vector<1x32x128xf32>
    %51 = vector.shape_cast %50 : vector<1x32x128xf32> to vector<32x128xf32>
    %52 = vector.extract_strided_slice %17 {offsets = [0, 6], sizes = [16, 128], strides = [1, 1]} : vector<16x256xf32> to vector<16x128xf32>
    %cst_46 = arith.constant dense<0.000000e+00> : vector<32x128xf32>
    %53 = tpu.matmul %49, %52, %cst_46 {dimension_numbers = #tpu.dot_dimension_numbers<[1], [0], [0], [1], [0, 0, 1, 1], [], []>} : vector<32x16xf32>, vector<16x128xf32>, vector<32x128xf32> -> vector<32x128xf32>
    %54 = arith.addf %51, %53 : vector<32x128xf32>
    %c0_47 = arith.constant 0 : index
    %c0_48 = arith.constant 0 : index
    %c0_49 = arith.constant 0 : index
    %55 = vector.load %arg6[%c0_47, %c0_48, %c0_49] : memref<1x32x128xf32, #tpu.memory_space<vmem>>, vector<1x32x128xf32>
    %56 = vector.shape_cast %55 : vector<1x32x128xf32> to vector<32x128xf32>
    %57 = vector.shape_cast %54 : vector<32x128xf32> to vector<1x32x128xf32>
    tpu.vector_store %arg6[%c0_47, %c0_48, %c0_49], %57 {strides = array<i32>} : memref<1x32x128xf32, #tpu.memory_space<vmem>>, vector<1x32x128xf32>,
    %c0_50 = arith.constant 0 : index
    %c1 = arith.constant 1 : index
    %c0_51 = arith.constant 0 : index
    %c0_52 = arith.constant 0 : index
    %58 = vector.load %arg1[%c0_50, %c1, %c0_51, %c0_52] : memref<1x4x16x256xf32, #tpu.memory_space<vmem>>, vector<1x1x16x256xf32>
    %59 = vector.shape_cast %58 : vector<1x1x16x256xf32> to vector<16x256xf32>
    %c0_53 = arith.constant 0 : index
    %c0_54 = arith.constant 0 : index
    %60 = vector.load %arg4[%c0_53, %c0_54] : memref<16x1xf32, #tpu.memory_space<vmem>>, vector<16x1xf32>
    %61 = vector.broadcast %60 : vector<16x1xf32> to vector<16x256xf32>
    %62 = arith.mulf %59, %61 : vector<16x256xf32>
    %c0_55 = arith.constant 0 : index
    %c0_56 = arith.constant 0 : index
    %63 = vector.load %arg5[%c0_55, %c0_56] : memref<16x1xf32, #tpu.memory_space<vmem>>, vector<16x1xf32>
    %64 = vector.broadcast %63 : vector<16x1xf32> to vector<16x256xf32>
    %65 = arith.addf %62, %64 : vector<16x256xf32>
    %cst_57 = arith.constant 5.000000e-01 : f32
    %66 = vector.broadcast %cst_57 : f32 to vector<16x256xf32>
    %67 = arith.mulf %66, %65 : vector<16x256xf32>
    %cst_58 = arith.constant 0.707106769 : f32
    %68 = vector.broadcast %cst_58 : f32 to vector<16x256xf32>
    %69 = arith.mulf %65, %68 : vector<16x256xf32>
    %70 = math.erf %69 : vector<16x256xf32>
    %cst_59 = arith.constant 1.000000e+00 : f32
    %71 = vector.broadcast %cst_59 : f32 to vector<16x256xf32>
    %72 = arith.addf %71, %70 : vector<16x256xf32>
    %73 = arith.mulf %67, %72 : vector<16x256xf32>
    %c1_60 = arith.constant 1 : index
    %c0_61 = arith.constant 0 : index
    %c0_62 = arith.constant 0 : index
    %74 = vector.load %arg2[%c1_60, %c0_61, %c0_62] : memref<9x32x16xf32, #tpu.memory_space<vmem>>, vector<1x32x16xf32>
    %75 = vector.shape_cast %74 : vector<1x32x16xf32> to vector<32x16xf32>
    %c0_63 = arith.constant 0 : index
    %c0_64 = arith.constant 0 : index
    %c0_65 = arith.constant 0 : index
    %76 = vector.load %arg6[%c0_63, %c0_64, %c0_65] : memref<1x32x128xf32, #tpu.memory_space<vmem>>, vector<1x32x128xf32>
    %77 = vector.shape_cast %76 : vector<1x32x128xf32> to vector<32x128xf32>
    %78 = vector.extract_strided_slice %73 {offsets = [0, 0], sizes = [16, 128], strides = [1, 1]} : vector<16x256xf32> to vector<16x128xf32>
    %cst_66 = arith.constant dense<0.000000e+00> : vector<32x128xf32>
    %79 = tpu.matmul %75, %78, %cst_66 {dimension_numbers = #tpu.dot_dimension_numbers<[1], [0], [0], [1], [0, 0, 1, 1], [], []>} : vector<32x16xf32>, vector<16x128xf32>, vector<32x128xf32> -> vector<32x128xf32>
    %80 = arith.addf %77, %79 : vector<32x128xf32>
    %c0_67 = arith.constant 0 : index
    %c0_68 = arith.constant 0 : index
    %c0_69 = arith.constant 0 : index
    %81 = vector.load %arg6[%c0_67, %c0_68, %c0_69] : memref<1x32x128xf32, #tpu.memory_space<vmem>>, vector<1x32x128xf32>
    %82 = vector.shape_cast %81 : vector<1x32x128xf32> to vector<32x128xf32>
    %83 = vector.shape_cast %80 : vector<32x128xf32> to vector<1x32x128xf32>
    tpu.vector_store %arg6[%c0_67, %c0_68, %c0_69], %83 {strides = array<i32>} : memref<1x32x128xf32, #tpu.memory_space<vmem>>, vector<1x32x128xf32>,
    %c7 = arith.constant 7 : index
    %c0_70 = arith.constant 0 : index
    %c0_71 = arith.constant 0 : index
    %84 = vector.load %arg2[%c7, %c0_70, %c0_71] : memref<9x32x16xf32, #tpu.memory_space<vmem>>, vector<1x32x16xf32>
    %85 = vector.shape_cast %84 : vector<1x32x16xf32> to vector<32x16xf32>
    %c0_72 = arith.constant 0 : index
    %c0_73 = arith.constant 0 : index
    %c0_74 = arith.constant 0 : index
    %86 = vector.load %arg6[%c0_72, %c0_73, %c0_74] : memref<1x32x128xf32, #tpu.memory_space<vmem>>, vector<1x32x128xf32>
    %87 = vector.shape_cast %86 : vector<1x32x128xf32> to vector<32x128xf32>
    %88 = vector.extract_strided_slice %73 {offsets = [0, 5], sizes = [16, 128], strides = [1, 1]} : vector<16x256xf32> to vector<16x128xf32>
    %cst_75 = arith.constant dense<0.000000e+00> : vector<32x128xf32>
    %89 = tpu.matmul %85, %88, %cst_75 {dimension_numbers = #tpu.dot_dimension_numbers<[1], [0], [0], [1], [0, 0, 1, 1], [], []>} : vector<32x16xf32>, vector<16x128xf32>, vector<32x128xf32> -> vector<32x128xf32>
    %90 = arith.addf %87, %89 : vector<32x128xf32>
    %c0_76 = arith.constant 0 : index
    %c0_77 = arith.constant 0 : index
    %c0_78 = arith.constant 0 : index
    %91 = vector.load %arg6[%c0_76, %c0_77, %c0_78] : memref<1x32x128xf32, #tpu.memory_space<vmem>>, vector<1x32x128xf32>
    %92 = vector.shape_cast %91 : vector<1x32x128xf32> to vector<32x128xf32>
    %93 = vector.shape_cast %90 : vector<32x128xf32> to vector<1x32x128xf32>
    tpu.vector_store %arg6[%c0_76, %c0_77, %c0_78], %93 {strides = array<i32>} : memref<1x32x128xf32, #tpu.memory_space<vmem>>, vector<1x32x128xf32>,
    %c0_79 = arith.constant 0 : index
    %c2_80 = arith.constant 2 : index
    %c0_81 = arith.constant 0 : index
    %c0_82 = arith.constant 0 : index
    %94 = vector.load %arg1[%c0_79, %c2_80, %c0_81, %c0_82] : memref<1x4x16x256xf32, #tpu.memory_space<vmem>>, vector<1x1x16x256xf32>
    %95 = vector.shape_cast %94 : vector<1x1x16x256xf32> to vector<16x256xf32>
    %c0_83 = arith.constant 0 : index
    %c0_84 = arith.constant 0 : index
    %96 = vector.load %arg4[%c0_83, %c0_84] : memref<16x1xf32, #tpu.memory_space<vmem>>, vector<16x1xf32>
    %97 = vector.broadcast %96 : vector<16x1xf32> to vector<16x256xf32>
    %98 = arith.mulf %95, %97 : vector<16x256xf32>
    %c0_85 = arith.constant 0 : index
    %c0_86 = arith.constant 0 : index
    %99 = vector.load %arg5[%c0_85, %c0_86] : memref<16x1xf32, #tpu.memory_space<vmem>>, vector<16x1xf32>
    %100 = vector.broadcast %99 : vector<16x1xf32> to vector<16x256xf32>
    %101 = arith.addf %98, %100 : vector<16x256xf32>
    %cst_87 = arith.constant 5.000000e-01 : f32
    %102 = vector.broadcast %cst_87 : f32 to vector<16x256xf32>
    %103 = arith.mulf %102, %101 : vector<16x256xf32>
    %cst_88 = arith.constant 0.707106769 : f32
    %104 = vector.broadcast %cst_88 : f32 to vector<16x256xf32>
    %105 = arith.mulf %101, %104 : vector<16x256xf32>
    %106 = math.erf %105 : vector<16x256xf32>
    %cst_89 = arith.constant 1.000000e+00 : f32
    %107 = vector.broadcast %cst_89 : f32 to vector<16x256xf32>
    %108 = arith.addf %107, %106 : vector<16x256xf32>
    %109 = arith.mulf %103, %108 : vector<16x256xf32>
    %c3 = arith.constant 3 : index
    %c0_90 = arith.constant 0 : index
    %c0_91 = arith.constant 0 : index
    %110 = vector.load %arg2[%c3, %c0_90, %c0_91] : memref<9x32x16xf32, #tpu.memory_space<vmem>>, vector<1x32x16xf32>
    %111 = vector.shape_cast %110 : vector<1x32x16xf32> to vector<32x16xf32>
    %c0_92 = arith.constant 0 : index
    %c0_93 = arith.constant 0 : index
    %c0_94 = arith.constant 0 : index
    %112 = vector.load %arg6[%c0_92, %c0_93, %c0_94] : memref<1x32x128xf32, #tpu.memory_space<vmem>>, vector<1x32x128xf32>
    %113 = vector.shape_cast %112 : vector<1x32x128xf32> to vector<32x128xf32>
    %114 = vector.extract_strided_slice %109 {offsets = [0, 0], sizes = [16, 128], strides = [1, 1]} : vector<16x256xf32> to vector<16x128xf32>
    %cst_95 = arith.constant dense<0.000000e+00> : vector<32x128xf32>
    %115 = tpu.matmul %111, %114, %cst_95 {dimension_numbers = #tpu.dot_dimension_numbers<[1], [0], [0], [1], [0, 0, 1, 1], [], []>} : vector<32x16xf32>, vector<16x128xf32>, vector<32x128xf32> -> vector<32x128xf32>
    %116 = arith.addf %113, %115 : vector<32x128xf32>
    %c0_96 = arith.constant 0 : index
    %c0_97 = arith.constant 0 : index
    %c0_98 = arith.constant 0 : index
    %117 = vector.load %arg6[%c0_96, %c0_97, %c0_98] : memref<1x32x128xf32, #tpu.memory_space<vmem>>, vector<1x32x128xf32>
    %118 = vector.shape_cast %117 : vector<1x32x128xf32> to vector<32x128xf32>
    %119 = vector.shape_cast %116 : vector<32x128xf32> to vector<1x32x128xf32>
    tpu.vector_store %arg6[%c0_96, %c0_97, %c0_98], %119 {strides = array<i32>} : memref<1x32x128xf32, #tpu.memory_space<vmem>>, vector<1x32x128xf32>,
    %c5 = arith.constant 5 : index
    %c0_99 = arith.constant 0 : index
    %c0_100 = arith.constant 0 : index
    %120 = vector.load %arg2[%c5, %c0_99, %c0_100] : memref<9x32x16xf32, #tpu.memory_space<vmem>>, vector<1x32x16xf32>
    %121 = vector.shape_cast %120 : vector<1x32x16xf32> to vector<32x16xf32>
    %c0_101 = arith.constant 0 : index
    %c0_102 = arith.constant 0 : index
    %c0_103 = arith.constant 0 : index
    %122 = vector.load %arg6[%c0_101, %c0_102, %c0_103] : memref<1x32x128xf32, #tpu.memory_space<vmem>>, vector<1x32x128xf32>
    %123 = vector.shape_cast %122 : vector<1x32x128xf32> to vector<32x128xf32>
    %124 = vector.extract_strided_slice %109 {offsets = [0, 1], sizes = [16, 128], strides = [1, 1]} : vector<16x256xf32> to vector<16x128xf32>
    %cst_104 = arith.constant dense<0.000000e+00> : vector<32x128xf32>
    %125 = tpu.matmul %121, %124, %cst_104 {dimension_numbers = #tpu.dot_dimension_numbers<[1], [0], [0], [1], [0, 0, 1, 1], [], []>} : vector<32x16xf32>, vector<16x128xf32>, vector<32x128xf32> -> vector<32x128xf32>
    %126 = arith.addf %123, %125 : vector<32x128xf32>
    %c0_105 = arith.constant 0 : index
    %c0_106 = arith.constant 0 : index
    %c0_107 = arith.constant 0 : index
    %127 = vector.load %arg6[%c0_105, %c0_106, %c0_107] : memref<1x32x128xf32, #tpu.memory_space<vmem>>, vector<1x32x128xf32>
    %128 = vector.shape_cast %127 : vector<1x32x128xf32> to vector<32x128xf32>
    %129 = vector.shape_cast %126 : vector<32x128xf32> to vector<1x32x128xf32>
    tpu.vector_store %arg6[%c0_105, %c0_106, %c0_107], %129 {strides = array<i32>} : memref<1x32x128xf32, #tpu.memory_space<vmem>>, vector<1x32x128xf32>,
    %c0_108 = arith.constant 0 : index
    %c3_109 = arith.constant 3 : index
    %c0_110 = arith.constant 0 : index
    %c0_111 = arith.constant 0 : index
    %130 = vector.load %arg1[%c0_108, %c3_109, %c0_110, %c0_111] : memref<1x4x16x256xf32, #tpu.memory_space<vmem>>, vector<1x1x16x256xf32>
    %131 = vector.shape_cast %130 : vector<1x1x16x256xf32> to vector<16x256xf32>
    %c0_112 = arith.constant 0 : index
    %c0_113 = arith.constant 0 : index
    %132 = vector.load %arg4[%c0_112, %c0_113] : memref<16x1xf32, #tpu.memory_space<vmem>>, vector<16x1xf32>
    %133 = vector.broadcast %132 : vector<16x1xf32> to vector<16x256xf32>
    %134 = arith.mulf %131, %133 : vector<16x256xf32>
    %c0_114 = arith.constant 0 : index
    %c0_115 = arith.constant 0 : index
    %135 = vector.load %arg5[%c0_114, %c0_115] : memref<16x1xf32, #tpu.memory_space<vmem>>, vector<16x1xf32>
    %136 = vector.broadcast %135 : vector<16x1xf32> to vector<16x256xf32>
    %137 = arith.addf %134, %136 : vector<16x256xf32>
    %cst_116 = arith.constant 5.000000e-01 : f32
    %138 = vector.broadcast %cst_116 : f32 to vector<16x256xf32>
    %139 = arith.mulf %138, %137 : vector<16x256xf32>
    %cst_117 = arith.constant 0.707106769 : f32
    %140 = vector.broadcast %cst_117 : f32 to vector<16x256xf32>
    %141 = arith.mulf %137, %140 : vector<16x256xf32>
    %142 = math.erf %141 : vector<16x256xf32>
    %cst_118 = arith.constant 1.000000e+00 : f32
    %143 = vector.broadcast %cst_118 : f32 to vector<16x256xf32>
    %144 = arith.addf %143, %142 : vector<16x256xf32>
    %145 = arith.mulf %139, %144 : vector<16x256xf32>
    %c4 = arith.constant 4 : index
    %c0_119 = arith.constant 0 : index
    %c0_120 = arith.constant 0 : index
    %146 = vector.load %arg2[%c4, %c0_119, %c0_120] : memref<9x32x16xf32, #tpu.memory_space<vmem>>, vector<1x32x16xf32>
    %147 = vector.shape_cast %146 : vector<1x32x16xf32> to vector<32x16xf32>
    %c0_121 = arith.constant 0 : index
    %c0_122 = arith.constant 0 : index
    %c0_123 = arith.constant 0 : index
    %148 = vector.load %arg6[%c0_121, %c0_122, %c0_123] : memref<1x32x128xf32, #tpu.memory_space<vmem>>, vector<1x32x128xf32>
    %149 = vector.shape_cast %148 : vector<1x32x128xf32> to vector<32x128xf32>
    %150 = vector.extract_strided_slice %145 {offsets = [0, 0], sizes = [16, 128], strides = [1, 1]} : vector<16x256xf32> to vector<16x128xf32>
    %cst_124 = arith.constant dense<0.000000e+00> : vector<32x128xf32>
    %151 = tpu.matmul %147, %150, %cst_124 {dimension_numbers = #tpu.dot_dimension_numbers<[1], [0], [0], [1], [0, 0, 1, 1], [], []>} : vector<32x16xf32>, vector<16x128xf32>, vector<32x128xf32> -> vector<32x128xf32>
    %152 = arith.addf %149, %151 : vector<32x128xf32>
    %c0_125 = arith.constant 0 : index
    %c0_126 = arith.constant 0 : index
    %c0_127 = arith.constant 0 : index
    %153 = vector.load %arg6[%c0_125, %c0_126, %c0_127] : memref<1x32x128xf32, #tpu.memory_space<vmem>>, vector<1x32x128xf32>
    %154 = vector.shape_cast %153 : vector<1x32x128xf32> to vector<32x128xf32>
    %155 = vector.shape_cast %152 : vector<32x128xf32> to vector<1x32x128xf32>
    tpu.vector_store %arg6[%c0_125, %c0_126, %c0_127], %155 {strides = array<i32>} : memref<1x32x128xf32, #tpu.memory_space<vmem>>, vector<1x32x128xf32>,
    %c0_128 = arith.constant 0 : index
    %c0_129 = arith.constant 0 : index
    %c0_130 = arith.constant 0 : index
    %156 = vector.load %arg6[%c0_128, %c0_129, %c0_130] : memref<1x32x128xf32, #tpu.memory_space<vmem>>, vector<1x32x128xf32>
    %157 = vector.shape_cast %156 : vector<1x32x128xf32> to vector<32x128xf32>
    %c0_131 = arith.constant 0 : index
    %c0_132 = arith.constant 0 : index
    %158 = vector.load %arg3[%c0_131, %c0_132] : memref<1x128xf32, #tpu.memory_space<vmem>>, vector<1x128xf32>
    %159 = vector.broadcast %158 : vector<1x128xf32> to vector<32x128xf32>
    %160 = arith.mulf %157, %159 : vector<32x128xf32>
    %cst_133 = arith.constant dense<0.000000e+00> : vector<32xf32>
    %161 = vector.multi_reduction <add>, %160, %cst_133 [1] : vector<32x128xf32> to vector<32xf32>
    %162 = vector.shape_cast %161 : vector<32xf32> to vector<32x1xf32>
    %c0_134 = arith.constant 0 : index
    %c0_135 = arith.constant 0 : index
    %c0_136 = arith.constant 0 : index
    %163 = vector.load %arg7[%c0_134, %c0_135, %c0_136] : memref<1x32x1xf32, #tpu.memory_space<vmem>>, vector<1x32x1xf32>
    %164 = vector.shape_cast %163 : vector<1x32x1xf32> to vector<32x1xf32>
    %165 = vector.shape_cast %162 : vector<32x1xf32> to vector<1x32x1xf32>
    tpu.vector_store %arg7[%c0_134, %c0_135, %c0_136], %165 {strides = array<i32>} : memref<1x32x1xf32, #tpu.memory_space<vmem>>, vector<1x32x1xf32>,
    %166 = arith.mulf %160, %157 : vector<32x128xf32>
    %cst_137 = arith.constant dense<0.000000e+00> : vector<32xf32>
    %167 = vector.multi_reduction <add>, %166, %cst_137 [1] : vector<32x128xf32> to vector<32xf32>
    %168 = vector.shape_cast %167 : vector<32xf32> to vector<32x1xf32>
    %c0_138 = arith.constant 0 : index
    %c0_139 = arith.constant 0 : index
    %c0_140 = arith.constant 0 : index
    %169 = vector.load %arg8[%c0_138, %c0_139, %c0_140] : memref<1x32x1xf32, #tpu.memory_space<vmem>>, vector<1x32x1xf32>
    %170 = vector.shape_cast %169 : vector<1x32x1xf32> to vector<32x1xf32>
    %171 = vector.shape_cast %168 : vector<32x1xf32> to vector<1x32x1xf32>
    tpu.vector_store %arg8[%c0_138, %c0_139, %c0_140], %171 {strides = array<i32>} : memref<1x32x1xf32, #tpu.memory_space<vmem>>, vector<1x32x1xf32>,
    return
  }
  func.func @transform_0(%arg0: i32) -> (i32, i32, i32, i32) {
    %c0_i32 = arith.constant 0 : i32
    %c0_i32_0 = arith.constant 0 : i32
    %c0_i32_1 = arith.constant 0 : i32
    %c0_i32_2 = arith.constant 0 : i32
    return %arg0, %c0_i32, %c0_i32_0, %c0_i32_1 : i32, i32, i32, i32
  }
  func.func @transform_1(%arg0: i32) -> (i32, i32, i32) {
    %c0_i32 = arith.constant 0 : i32
    %c0_i32_0 = arith.constant 0 : i32
    %c0_i32_1 = arith.constant 0 : i32
    %c0_i32_2 = arith.constant 0 : i32
    return %c0_i32, %c0_i32_0, %c0_i32_1 : i32, i32, i32
  }
  func.func @transform_2(%arg0: i32) -> (i32, i32) {
    %c0_i32 = arith.constant 0 : i32
    %c0_i32_0 = arith.constant 0 : i32
    %c0_i32_1 = arith.constant 0 : i32
    return %c0_i32, %c0_i32_0 : i32, i32
  }
  func.func @transform_3(%arg0: i32) -> (i32, i32) {
    %c0_i32 = arith.constant 0 : i32
    %c0_i32_0 = arith.constant 0 : i32
    %c0_i32_1 = arith.constant 0 : i32
    return %c0_i32, %c0_i32_0 : i32, i32
  }
  func.func @transform_4(%arg0: i32) -> (i32, i32) {
    %c0_i32 = arith.constant 0 : i32
    %c0_i32_0 = arith.constant 0 : i32
    %c0_i32_1 = arith.constant 0 : i32
    return %c0_i32, %c0_i32_0 : i32, i32
  }
  func.func @transform_5(%arg0: i32) -> (i32, i32, i32) {
    %c0_i32 = arith.constant 0 : i32
    %c0_i32_0 = arith.constant 0 : i32
    %c0_i32_1 = arith.constant 0 : i32
    return %arg0, %c0_i32, %c0_i32_0 : i32, i32, i32
  }
  func.func @transform_6(%arg0: i32) -> (i32, i32, i32) {
    %c0_i32 = arith.constant 0 : i32
    %c0_i32_0 = arith.constant 0 : i32
    %c0_i32_1 = arith.constant 0 : i32
    return %arg0, %c0_i32, %c0_i32_0 : i32, i32, i32
  }
  func.func @transform_7(%arg0: i32) -> (i32, i32, i32) {
    %c0_i32 = arith.constant 0 : i32
    %c0_i32_0 = arith.constant 0 : i32
    %c0_i32_1 = arith.constant 0 : i32
    return %arg0, %c0_i32, %c0_i32_0 : i32, i32, i32
  }
}

</mosaic_0001>

<bundles_post_ra>
// kernel: stack_conv_patch_embed.2
= control target key start
LH: loop header
LB: loop body
LE: loop exit
PB: predicated region body
PF: predicated region fallthrough
CT: control target
= control target key end

     0   :  { %s1554_s24 = smov 0   ;;  %s1684_s0 = inlined_call_operand.vmem [shape: f32[2,4,4,256], index: 0, kind: input, shape index: {}]   ;;  %s1685_s1 = inlined_call_operand.vmem [shape: f32[9,16,4], index: 1, kind: input, shape index: {}]   ;;  %s1686_s2 = inlined_call_operand.vmem [shape: f32[1,128], index: 2, kind: input, shape index: {}]   ;;  %s1687_s3 = inlined_call_operand.vmem [shape: f32[4,1], index: 3, kind: input, shape index: {}]   ;;  %s1688_s4 = inlined_call_operand.vmem [shape: f32[4,1], index: 4, kind: input, shape index: {}]   ;;  %s1689_s5 = inlined_call_operand.vmem [shape: f32[2,16,128], index: 5, kind: output, shape index: {0}]   ;;  %s1690_s6 = inlined_call_operand.vmem [shape: f32[2,16,1], index: 6, kind: output, shape index: {1}]   ;;  %s1691_s7 = inlined_call_operand.vmem [shape: f32[2,16,1], index: 7, kind: output, shape index: {2}]  }
   0x1 LB: > { %s1324_s3 = sadd.s32 4294967295, %s1509_s24   ;;  %p1328_p0 = scmp.ge.s32.totalorder %s1509_s24, 1  ;;  %s1509_s24 = sphi %s1554_s24, %s18_s24  }
   0x2   : > { %p242_p1 = scmp.lt.s32.totalorder %s1509_s24, 3 }
   0x4   : > { %p243_p2 = pnand %p1328_p0, %p242_p1 }
   0x5   : > { %p284_p3 = scmp.lt.s32.totalorder (!%p243_p2), %s1324_s3, 1  ;;  %v307_v0 = vld [vmem:[%s1685_s1] sm:$0xff] (!%p243_p2)  ;;  %vm311_vm0 = vcmask (!%p243_p2), 31744   ;;  %v1356_v1 = vld [vmem:[%s1685_s1 + $0x10] sm:$0xff] (!%p243_p2)  ;;  %vm318_vm1 = vcmask (!%p243_p2), 1043456   ;;  %s1511_s9 = smov (!%p243_p2), 119  }
   0x6   : > { %246 = sbr.rel (%p243_p2) target bundleno = 531 (0x213), region = 40  ;;  %1419 = vmatprep.mubr.msk.f32.mxu1 (!%p243_p2), %vm311_vm0, %v307_v0  ;;  %1439 = vmatprep.mubr.msk.f32.mxu0 (!%p243_p2), %vm311_vm0, %v1356_v1  ;;  %s1512_s10 = smov (!%p243_p2), 127   ;;  %v1357_v6 = vld [vmem:[%s1685_s1 + $0x18] sm:$0xff] (!%p243_p2)  ;;  %v308_v7 = vld [vmem:[%s1685_s1 + $0x8] sm:$0xff] (!%p243_p2)  ;;  %v1340_v8 = vld [vmem:[%s1685_s1 + $0x20] sm:$0xff] (!%p243_p2)  ;;  %vm509_vm2 = vcmask (!%p243_p2), 973824  }
   0x7   : > { %v1361_v9 = vld [vmem:[%s1685_s1 + $0x70] sm:$0xff] (!%p243_p2)  ;;  %s1513_s19 = smov (!%p243_p2), 118   ;;  %vm411_vm3 = vcmask (!%p243_p2), 1039360   ;;  %v1341_v18 = vld [vmem:[%s1685_s1 + $0x28] sm:$0xff] (!%p243_p2)  ;;  %v1362_v19 = vld [vmem:[%s1685_s1 + $0x78] sm:$0xff] (!%p243_p2)  ;;  %vm607_vm4 = vcmask (!%p243_p2), 965632  }
   0x8   : > { %v1345_v20 = vld [vmem:[%s1685_s1 + $0x60] sm:$0xff] (!%p243_p2)  ;;  %v1367_v23 = vld [vmem:[%s1685_s1 + $0x30] sm:$0xff] (!%p243_p2)  ;;  %v1368_v27 = vld [vmem:[%s1685_s1 + $0x38] sm:$0xff] (!%p243_p2)  ;;  %vm1192_vm5 = vcmask (!%p243_p2), 7168  }
   0x9   : > { %v1346_v29 = vld [vmem:[%s1685_s1 + $0x68] sm:$0xff] (!%p243_p2)  ;;  %v1350_v30 = vld [vmem:[%s1685_s1 + $0x80] sm:$0xff] (!%p243_p2)  ;;  %v1372_v31 = vld [vmem:[%s1685_s1 + $0x50] sm:$0xff] (!%p243_p2) }
   0xa   : > { %v1351_v36 = vld [vmem:[%s1685_s1 + $0x88] sm:$0xff] (!%p243_p2)  ;;  %v1373_v37 = vld [vmem:[%s1685_s1 + $0x58] sm:$0xff] (!%p243_p2)  ;;  %v1378_v38 = vld [vmem:[%s1685_s1 + $0x40] sm:$0xff] (!%p243_p2) }
   0xb   : > { %v1379_v39 = vld [vmem:[%s1685_s1 + $0x48] sm:$0xff] (!%p243_p2)  ;;  %v1383_v43 = vld [vmem:[%s1686_s2] ss:$0 sm:$0xff] (!%p243_p2) }
   0xd   : > { %s1693_s3 = smov (!%p284_p3, %s1324_s3), 1 }
   0xe   : > { %s1386_s28 = sshll.u32 %s1693_s3, 5  ;;  %s1387_s21 = sshll.u32 %s1693_s3, 4 }
   0xf   : > { %s1576_s8 = scalar_lea.vmem %s1684_s0, %s1386_s28  ;;  %s293_s4 = scalar_lea.vmem %s1689_s5, %s1387_s21 }
  0x10   : > { %v1355_v2 = vld [vmem:[%s1576_s8 + $0x8] sm:$0xff]  ;;  %v306_v3 = vld [vmem:[%s1576_s8] sm:$0xff]  ;;  %v1366_v10 = vld [vmem:[%s1576_s8 + $0x10] sm:$0xff]  ;;  %s298_s28 = scalar_lea.vmem %s1690_s6, %s1387_s21 }
  0x11   : > { %797 = vrot.lane.b32.xlu1 %v1355_v2, %s1511_s9  ;;  %407 = vrot.lane.b32.xlu0 %v306_v3, %s1512_s10  ;;  %v796_v4 = vcombine.high %v1355_v2, %v1355_v2  ;;  %v406_v5 = vcombine.high %v306_v3, %v306_v3  ;;  %v989_v11 = vcombine.high %v1366_v10, %v1366_v10  ;;  %v1377_v35 = vld [vmem:[%s1576_s8 + $0x18] sm:$0xff] }
  0x12   : > { %1417 = vmatprep.subr.msk.mxu1 %vm318_vm1, %v306_v3  ;;  %1437 = vmatprep.subr.msk.mxu0 %vm318_vm1, %v1355_v2 }
  0x13   : > { %1418 = vmatpush3.msk.msra.mxu1 %vm318_vm1, %v306_v3  ;;  %1438 = vmatpush3.msk.msra.mxu0 %vm318_vm1, %v1355_v2 }
  0x14   : > { %1440 = vmatmul.mubr.msk.f32.vlgmr.msra.gmra.mrb[0].mxu0 %vm311_vm0, %v1357_v6  ;;  %1420 = vmatmul.mubr.msk.f32.vlgmr.msra.gmra.mrb[0].mxu1 %vm311_vm0, %v308_v7 }
  0x15   : > { %799 = vrot.lane.b32.xlu1 %v796_v4, %s1511_s9  ;;  %409 = vrot.lane.b32.xlu0 %v406_v5, %s1512_s10 }
  0x16   : > { %1424 = vmatprep.mubr.msk.f32.mxu1 %vm311_vm0, %v1340_v8  ;;  %1444 = vmatprep.mubr.msk.f32.mxu0 %vm311_vm0, %v1361_v9 }
  0x19   : > { %507 = vrot.lane.b32.xlu1 %v406_v5, %s1511_s9  ;;  %505 = vrot.lane.b32.xlu0 %v306_v3, %s1511_s9  ;;  %s303_s9 = scalar_lea.vmem %s1691_s7, %s1387_s21 }
  0x1d   : > { %605 = vrot.lane.b32.xlu1 %v406_v5, %s1513_s19  ;;  %603 = vrot.lane.b32.xlu0 %v306_v3, %s1513_s19 }
  0x21   : > { %992 = vrot.lane.b32.xlu1 %v989_v11, %s1512_s10  ;;  %990 = vrot.lane.b32.xlu0 %v1366_v10, %s1512_s10 }
  0x83   : > { %v798_v12 = vpop.permute.xlu1 %797  ;;  %v408_v13 = vpop.permute.xlu0 %407 }
  0x87   : > { %v800_v14 = vpop.permute.xlu1 %799  ;;  %v410_v15 = vpop.permute.xlu0 %409 }
  0x88   : > { %v801_v16 = vsel %vm509_vm2, %v798_v12, %v800_v14  ;;  %v412_v17 = vsel %vm411_vm3, %v408_v13, %v410_v15 }
  0x89   : > { %1422 = vmatprep.subr.msk.mxu1 %vm318_vm1, %v412_v17  ;;  %1442 = vmatprep.subr.msk.mxu0 %vm318_vm1, %v801_v16 }
  0x8a   : > { %1423 = vmatpush3.msk.msra.mxu1 %vm318_vm1, %v412_v17  ;;  %1443 = vmatpush3.msk.msra.mxu0 %vm318_vm1, %v801_v16 }
  0x8b   : > { %1425 = vmatmul.mubr.msk.f32.vlgmr.msra.gmra.mrb[0].mxu1 %vm311_vm0, %v1341_v18  ;;  %1445 = vmatmul.mubr.msk.f32.vlgmr.msra.gmra.mrb[0].mxu0 %vm311_vm0, %v1362_v19  ;;  %v508_v21 = vpop.permute.xlu1 %507  ;;  %v506_v22 = vpop.permute.xlu0 %505 }
  0x8c   : > { %v510_v24 = vsel %vm509_vm2, %v506_v22, %v508_v21  ;;  %1447 = vmatprep.subr.msk.mxu0 %vm318_vm1, %v1366_v10  ;;  %1429 = vmatprep.mubr.msk.f32.mxu1 %vm311_vm0, %v1345_v20 }
  0x8d   : > { %1427 = vmatprep.subr.msk.mxu1 %vm318_vm1, %v510_v24  ;;  %1448 = vmatpush3.msk.msra.mxu0 %vm318_vm1, %v1366_v10 }
  0x8e   : > { %1428 = vmatpush3.msk.msra.mxu1 %vm318_vm1, %v510_v24  ;;  %1449 = vmatprep.mubr.msk.f32.mxu0 %vm311_vm0, %v1367_v23 }
  0x8f   : > { %v606_v25 = vpop.permute.xlu1 %605  ;;  %v604_v26 = vpop.permute.xlu0 %603 }
  0x90   : > { %v608_v28 = vsel %vm607_vm4, %v604_v26, %v606_v25 }
  0x91   : > { %1432 = vmatprep.subr.msk.mxu1 %vm318_vm1, %v608_v28 }
  0x93   : > { %1450 = vmatmul.mubr.msk.f32.vlgmr.msra.gmra.mrb[0].mxu0 %vm311_vm0, %v1368_v27  ;;  %1430 = vmatmul.mubr.msk.f32.vlgmr.msra.gmra.mrb[0].mxu1 %vm311_vm0, %v1346_v29  ;;  %v993_v32 = vpop.permute.xlu1 %992  ;;  %v991_v33 = vpop.permute.xlu0 %990 }
  0x94   : > { %v994_v34 = vsel %vm411_vm3, %v991_v33, %v993_v32  ;;  %1433 = vmatpush3.msk.msra.mxu1 %vm318_vm1, %v608_v28  ;;  %1434 = vmatprep.mubr.msk.f32.mxu1 %vm311_vm0, %v1350_v30 }
  0x95   : > { %1452 = vmatprep.subr.msk.mxu0 %vm318_vm1, %v994_v34  ;;  %1454 = vmatprep.mubr.msk.f32.mxu0 %vm311_vm0, %v1372_v31 }
  0x96   : > { %1453 = vmatpush3.msk.msra.mxu0 %vm318_vm1, %v994_v34 }
  0x97   : > { %1457 = vmatprep.subr.msk.mxu0 %vm318_vm1, %v1377_v35 }
  0x9b   : > { %1435 = vmatmul.mubr.msk.f32.vlgmr.msra.gmra.mrb[0].mxu1 %vm311_vm0, %v1351_v36  ;;  %1455 = vmatmul.mubr.msk.f32.vlgmr.msra.gmra.mrb[0].mxu0 %vm311_vm0, %v1373_v37 }
  0x9c   : > { %1458 = vmatpush3.msk.msra.mxu0 %vm318_vm1, %v1377_v35  ;;  %1459 = vmatprep.mubr.msk.f32.mxu0 %vm311_vm0, %v1378_v38 }
  0xa3   : > { %1460 = vmatmul.mubr.msk.f32.vlgmr.msra.gmra.mrb[0].mxu0 %vm311_vm0, %v1379_v39 }
 0x16e   : > { %v1436_v40 = vpop.f32.mrb[0].mxu1 }
 0x16f   : > { %v683_v41 = vpop.f32.mrb[1].mxu1 }
 0x176   : > { %v1461_v42 = vpop.f32.mrb[0].mxu0 }
 0x177   : > { %v1467_v44 = vadd.f32 %v1461_v42, %v1436_v40  ;;  %v1164_v45 = vpop.f32.mrb[1].mxu0 }
 0x178   : > { %v1473_v46 = vadd.f32 %v1164_v45, %v683_v41 }
 0x179   : > { %1176 = vst [vmem:[%s293_s4 + $0x8] sm:$0xff] %v1467_v44  ;;  %v1187_v47 = vmul.f32 %v1467_v44, %v1383_v43 }
 0x17a   : > { %1175 = vst [vmem:[%s293_s4] sm:$0xff] %v1473_v46  ;;  %v1186_v48 = vmul.f32 %v1473_v46, %v1383_v43 }
 0x17b   : > { %1190 = vadd.xlane.f32.xlu1 %v1187_v47  ;;  %v1196_v50 = vmul.f32 %v1467_v44, %v1187_v47 }
 0x17c   : > { %1188 = vadd.xlane.f32.xlu0 %v1186_v48  ;;  %v1195_v49 = vmul.f32 %v1473_v46, %v1186_v48 }
 0x180   : > { %1197 = vadd.xlane.f32.xlu0 %v1195_v49 }
 0x184   : > { %1199 = vadd.xlane.f32.xlu0 %v1196_v50 }
 0x208   : > { %v1191_v51 = vpop.xlane.xlu1 %1190 }
 0x209   : > { %1194 = vst.msk [vmem:[%s298_s28 + $0x8] sm:$0xff] %vm1192_vm5, %v1191_v51  ;;  %v1189_v52 = vpop.xlane.xlu0 %1188 }
 0x20a   : > { %1193 = vst.msk [vmem:[%s298_s28] sm:$0xff] %vm1192_vm5, %v1189_v52 }
 0x20d   : > { %v1198_v53 = vpop.xlane.xlu0 %1197 }
 0x20e   : > { %1201 = vst.msk [vmem:[%s303_s9] sm:$0xff] %vm1192_vm5, %v1198_v53 }
 0x211   : > { %v1200_v54 = vpop.xlane.xlu0 %1199 }
 0x212   : > { %1202 = vst.msk [vmem:[%s303_s9 + $0x8] sm:$0xff] %vm1192_vm5, %v1200_v54 }
 0x213 PF: > { %s18_s24 = sadd.s32 1, %s1509_s24  }
 0x214   : > { %p15_p4 = scmp.ge.s32.totalorder %s18_s24, 4  }
 0x216   :  { %17 = sbr.rel (!%p15_p4) target bundleno = 1 (0x1), region = 105 }

// kernel: stack_conv_patch_embed.3
= control target key start
LH: loop header
LB: loop body
LE: loop exit
PB: predicated region body
PF: predicated region fallthrough
CT: control target
= control target key end

     0   :  { %s2262_s24 = smov 0   ;;  %s2539_s0 = inlined_call_operand.vmem [shape: f32[2,4,16,256], index: 0, kind: input, shape index: {}]   ;;  %s2540_s1 = inlined_call_operand.vmem [shape: f32[9,32,16], index: 1, kind: input, shape index: {}]   ;;  %s2541_s2 = inlined_call_operand.vmem [shape: f32[1,128], index: 2, kind: input, shape index: {}]   ;;  %s2542_s3 = inlined_call_operand.vmem [shape: f32[16,1], index: 3, kind: input, shape index: {}]   ;;  %s2543_s4 = inlined_call_operand.vmem [shape: f32[16,1], index: 4, kind: input, shape index: {}]   ;;  %s2544_s5 = inlined_call_operand.vmem [shape: f32[2,32,128], index: 5, kind: output, shape index: {0}]   ;;  %s2545_s6 = inlined_call_operand.vmem [shape: f32[2,32,1], index: 6, kind: output, shape index: {1}]   ;;  %s2546_s7 = inlined_call_operand.vmem [shape: f32[2,32,1], index: 7, kind: output, shape index: {2}]  }
   0x1 LB: > { %s1785_s25 = sadd.s32 4294967295, %s2216_s24   ;;  %p1789_p0 = scmp.ge.s32.totalorder %s2216_s24, 1  ;;  %s2216_s24 = sphi %s2262_s24, %s18_s24  }
   0x2   : > { %p242_p1 = scmp.lt.s32.totalorder %s2216_s24, 3 }
   0x4   : > { %p243_p2 = pnand %p1789_p0, %p242_p1 }
   0x5   : > { %v2273_v0 = vld [vmem:[%s2543_s4] sm:$0xff] (!%p243_p2)  ;;  %v2218_v2 = vmov (!%p243_p2), 0   ;;  %v2282_v3 = vld [vmem:[%s2543_s4 + $0x8] sm:$0xff] (!%p243_p2)  ;;  %p284_p3 = scmp.lt.s32.totalorder (!%p243_p2), %s1785_s25, 1  ;;  %vm372_vm0 = vcmask (!%p243_p2), 130048   ;;  %s2219_s17 = smov (!%p243_p2), 127  }
   0x6   : > { %246 = sbr.rel (%p243_p2) target bundleno = 713 (0x2c9), region = 40  ;;  %v312_v1 = vld [vmem:[%s2542_s3] sm:$0xff] (!%p243_p2)  ;;  %2131 = vset.pattern.permute.xlu1 (!%p243_p2), %v2218_v2  ;;  %2130 = vset.pattern.permute.xlu0 (!%p243_p2), %v2218_v2  ;;  %v313_v4 = vld [vmem:[%s2542_s3 + $0x8] sm:$0xff] (!%p243_p2)  ;;  %s2220_s22 = smov (!%p243_p2), 123   ;;  %vm499_vm1 = vcmask (!%p243_p2), 1039360   ;;  %vm626_vm2 = vcmask (!%p243_p2), 1006592  }
   0x7   : > { %332 = vperm.xlu1 (!%p243_p2), %2131, %v2273_v0   ;;  %316 = vperm.xlu0 (!%p243_p2), %2130, %v312_v1   ;;  %v364_v52 = vld [vmem:[%s2540_s1] sm:$0xff] (!%p243_p2)  ;;  %s2221_s8 = smov (!%p243_p2), 122   ;;  %vm753_vm3 = vcmask (!%p243_p2), 998400   ;;  %vm1643_vm4 = vcmask (!%p243_p2), 7168  }
   0x8   : > { %1941 = vmatprep.mubr.msk.f32.mxu1 (!%p243_p2), %vm372_vm0, %v364_v52 }
   0xb   : > { %337 = vperm.xlu1 (!%p243_p2), %2131, %v2282_v3   ;;  %321 = vperm.xlu0 (!%p243_p2), %2130, %v313_v4  }
   0xd   : > { %s2548_s25 = smov (!%p284_p3, %s1785_s25), 1 }
   0xe   : > { %s1879_s11 = sshll.u32 %s2548_s25, 7  ;;  %s2511_s29 = sshll.u32 %s2548_s25, 5 }
   0xf   : > { %877 = vperm.xlu1 %2131, %v313_v4   ;;  %872 = vperm.xlu0 %2130, %v312_v1   ;;  %s2298_s14 = scalar_lea.vmem %s2539_s0, %s1879_s11  ;;  %s293_s9 = scalar_lea.vmem %s2544_s5, %s2511_s29 }
  0x10   : > { %v308_v5 = vld [vmem:[%s2298_s14] sm:$0xff]  ;;  %v309_v6 = vld [vmem:[%s2298_s14 + $0x8] sm:$0xff]  ;;  %v310_v13 = vld [vmem:[%s2298_s14 + $0x10] sm:$0xff]  ;;  %s298_s13 = scalar_lea.vmem %s2545_s6, %s2511_s29 }
  0x11   : > { %v311_v14 = vld [vmem:[%s2298_s14 + $0x18] sm:$0xff]  ;;  %v1828_v24 = vld [vmem:[%s2298_s14 + $0x30] sm:$0xff]  ;;  %v1826_v27 = vld [vmem:[%s2298_s14 + $0x20] sm:$0xff] }
  0x12   : > { %v1829_v25 = vld [vmem:[%s2298_s14 + $0x38] sm:$0xff]  ;;  %v1827_v28 = vld [vmem:[%s2298_s14 + $0x28] sm:$0xff]  ;;  %v1848_v43 = vld [vmem:[%s2298_s14 + $0x50] sm:$0xff] }
  0x13   : > { %893 = vperm.xlu1 %2131, %v2282_v3   ;;  %888 = vperm.xlu0 %2130, %v2273_v0   ;;  %v1849_v44 = vld [vmem:[%s2298_s14 + $0x58] sm:$0xff]  ;;  %v1846_v49 = vld [vmem:[%s2298_s14 + $0x40] sm:$0xff]  ;;  %v1847_v51 = vld [vmem:[%s2298_s14 + $0x48] sm:$0xff] }
  0x17   : > { %1178 = vperm.xlu1 %2131, %v313_v4   ;;  %1173 = vperm.xlu0 %2130, %v312_v1  }
  0x1b   : > { %1194 = vperm.xlu1 %2131, %v2282_v3   ;;  %1189 = vperm.xlu0 %2130, %v2273_v0  }
  0x1f   : > { %1477 = vperm.xlu1 %2131, %v313_v4   ;;  %1472 = vperm.xlu0 %2130, %v312_v1  }
  0x86   : > { %v333_v7 = vpop.permute.xlu1 %332  ;;  %v317_v8 = vpop.permute.xlu0 %316 }
  0x87   : > { %v324_v9 = vmul.f32 %v317_v8, %v308_v5  ;;  %v325_v10 = vmul.f32 %v317_v8, %v309_v6 }
  0x89   : > { %v340_v11 = vadd.f32 %v333_v7, %v324_v9  ;;  %v341_v12 = vadd.f32 %v333_v7, %v325_v10 }
  0x8a   : > { %v338_v15 = vpop.permute.xlu1 %337  ;;  %v322_v16 = vpop.permute.xlu0 %321 }
  0x8b   : > { %v348_v17 = vmul.f32 0.70710677, %v340_v11  ;;  %v349_v18 = vmul.f32 0.70710677, %v341_v12  ;;  %v326_v19 = vmul.f32 %v322_v16, %v310_v13  ;;  %v327_v20 = vmul.f32 %v322_v16, %v311_v14 }
  0x8c   : > { %v344_v59 = vmul.f32 0.5, %v340_v11  ;;  %v345_v63 = vmul.f32 0.5, %v341_v12 }
  0x8d   : > { %2182 = verf.f32 %v348_v17  ;;  %v342_v21 = vadd.f32 %v338_v15, %v326_v19  ;;  %v343_v22 = vadd.f32 %v338_v15, %v327_v20 }
  0x8e   : > { %2184 = verf.f32 %v349_v18  ;;  %v878_v23 = vpop.permute.xlu1 %877  ;;  %v873_v26 = vpop.permute.xlu0 %872 }
  0x8f   : > { %v350_v29 = vmul.f32 0.70710677, %v342_v21  ;;  %v351_v30 = vmul.f32 0.70710677, %v343_v22  ;;  %v882_v31 = vmul.f32 %v1828_v24, %v878_v23  ;;  %v883_v32 = vmul.f32 %v1829_v25, %v878_v23 }
  0x90   : > { %v880_v33 = vmul.f32 %v1826_v27, %v873_v26  ;;  %v881_v34 = vmul.f32 %v1827_v28, %v873_v26  ;;  %v346_v6 = vmul.f32 0.5, %v342_v21  ;;  %v347_v15 = vmul.f32 0.5, %v343_v22 }
  0x91   : > { %2186 = verf.f32 %v350_v29 }
  0x92   : > { %v894_v35 = vpop.permute.xlu1 %893  ;;  %v889_v36 = vpop.permute.xlu0 %888  ;;  %2188 = verf.f32 %v351_v30 }
  0x93   : > { %v898_v37 = vadd.f32 %v894_v35, %v882_v31  ;;  %v2308_v38 = vadd.f32 %v894_v35, %v883_v32  ;;  %v2310_v39 = vadd.f32 %v889_v36, %v880_v33  ;;  %v2312_v40 = vadd.f32 %v889_v36, %v881_v34  ;;  %v365_v32 = vld [vmem:[%s2540_s1 + $0x8] sm:$0xff] }
  0x95   : > { %v906_v41 = vmul.f32 0.70710677, %v898_v37  ;;  %v907_v42 = vmul.f32 0.70710677, %v2308_v38  ;;  %v904_v45 = vmul.f32 0.70710677, %v2310_v39 }
  0x96   : > { %v905_v46 = vmul.f32 0.70710677, %v2312_v40  ;;  %v1179_v47 = vpop.permute.xlu1 %1178  ;;  %v1174_v48 = vpop.permute.xlu0 %1173  ;;  %v902_v25 = vmul.f32 0.5, %v898_v37  ;;  %v900_v30 = vmul.f32 0.5, %v2310_v39  ;;  %v901_v36 = vmul.f32 0.5, %v2312_v40 }
  0x97   : > { %v2183_v50 = vpop.eup %2182  ;;  %2190 = verf.f32 %v906_v41  ;;  %v1183_v54 = vmul.f32 %v1848_v43, %v1179_v47  ;;  %v1184_v55 = vmul.f32 %v1849_v44, %v1179_v47  ;;  %v1181_v58 = vmul.f32 %v1846_v49, %v1174_v48 }
  0x98   : > { %v2185_v53 = vpop.eup %2184  ;;  %2192 = verf.f32 %v907_v42  ;;  %v356_v56 = vadd.f32 1.0, %v2183_v50  ;;  %v1182_v60 = vmul.f32 %v1847_v51, %v1174_v48  ;;  %v903_v37 = vmul.f32 0.5, %v2308_v38 }
  0x99   : > { %v357_v57 = vadd.f32 1.0, %v2185_v53  ;;  %2194 = verf.f32 %v904_v45 }
  0x9a   : > { %2196 = verf.f32 %v905_v46  ;;  %v1195_v61 = vpop.permute.xlu1 %1194  ;;  %v1190_v62 = vpop.permute.xlu0 %1189  ;;  %v360_v9 = vmul.f32 %v356_v56, %v344_v59 }
  0x9b   : > { %v1199_v1 = vadd.f32 %v1195_v61, %v1183_v54  ;;  %v2325_v2 = vadd.f32 %v1195_v61, %v1184_v55  ;;  %v1197_v4 = vadd.f32 %v1190_v62, %v1181_v58  ;;  %v2187_v5 = vpop.eup %2186  ;;  %v2327_v7 = vadd.f32 %v1190_v62, %v1182_v60  ;;  %v1802_v55 = vld [vmem:[%s2540_s1 + $0x40] sm:$0xff]  ;;  %v1831_v62 = vld [vmem:[%s2540_s1 + $0x28] sm:$0xff] }
  0x9c   : > { %v2189_v8 = vpop.eup %2188  ;;  %v361_v10 = vmul.f32 %v357_v57, %v345_v63  ;;  %v358_v13 = vadd.f32 1.0, %v2187_v5  ;;  %v1830_v61 = vld [vmem:[%s2540_s1 + $0x20] sm:$0xff] }
  0x9d   : > { %v1207_v14 = vmul.f32 0.70710677, %v1199_v1  ;;  %v359_v11 = vadd.f32 1.0, %v2189_v8  ;;  %v1208_v16 = vmul.f32 0.70710677, %v2325_v2  ;;  %v1203_v45 = vmul.f32 0.5, %v1199_v1  ;;  %1981 = vmatprep.mubr.msk.f32.mxu0 %vm372_vm0, %v1830_v61 }
  0x9e   : > { %v362_v17 = vmul.f32 %v358_v13, %v346_v6  ;;  %v1205_v12 = vmul.f32 0.70710677, %v1197_v4  ;;  %v1206_v18 = vmul.f32 0.70710677, %v2327_v7  ;;  %v2132_v21 = vpack.i.bf16 %v361_v10, %v360_v9  ;;  %v1478_v5 = vpop.permute.xlu1 %1477 }
  0x9f   : > { %2198 = verf.f32 %v1207_v14  ;;  %v363_v19 = vmul.f32 %v359_v11, %v347_v15  ;;  %v1201_v48 = vmul.f32 0.5, %v1197_v4  ;;  %v1202_v56 = vmul.f32 0.5, %v2327_v7  ;;  %v1473_v4 = vpop.permute.xlu0 %1472 }
  0xa0   : > { %2200 = verf.f32 %v1208_v16  ;;  %v2027_v23 = vpack.c.bf16 %v362_v17, %v360_v9  ;;  %2133 = vrot.lane.b32.xlu0 %v2132_v21, %s2219_s17  ;;  %v1204_v57 = vmul.f32 0.5, %v2325_v2  ;;  %v1838_v2 = vld [vmem:[%s2540_s1 + $0xe0] sm:$0xff]  ;;  %v1803_v16 = vld [vmem:[%s2540_s1 + $0x48] sm:$0xff] }
  0xa1   : > { %v2191_v20 = vpop.eup %2190  ;;  %2202 = verf.f32 %v1205_v12  ;;  %v2137_v27 = vpack.i.bf16 %v363_v19, %v362_v17  ;;  %v1804_v17 = vld [vmem:[%s2540_s1 + $0x50] sm:$0xff]  ;;  %v1805_v12 = vld [vmem:[%s2540_s1 + $0x58] sm:$0xff]  ;;  %v1810_v19 = vld [vmem:[%s2540_s1 + $0xc0] sm:$0xff] }
  0xa2   : > { %v2193_v24 = vpop.eup %2192  ;;  %v914_v26 = vadd.f32 1.0, %v2191_v20  ;;  %2204 = verf.f32 %v1206_v18  ;;  %2028 = vmatprep.subr.bf16.mxu1 %v2027_v23  ;;  %v1866_v18 = vld [vmem:[%s2298_s14 + $0x60] sm:$0xff]  ;;  %v1867_v20 = vld [vmem:[%s2298_s14 + $0x70] sm:$0xff] }
  0xa3   : > { %v2195_v22 = vpop.eup %2194  ;;  %2138 = vrot.lane.b32.xlu1 %v2137_v27, %s2219_s17  ;;  %2030 = vmatpush3.bf16.msra.mxu1 %v2027_v23  ;;  %v915_v34 = vadd.f32 1.0, %v2193_v24  ;;  %v1481_v23 = vmul.f32 %v1867_v20, %v1478_v5  ;;  %v1851_v20 = vld [vmem:[%s2540_s1 + $0x68] sm:$0xff] }
  0xa4   : > { %v2197_v28 = vpop.eup %2196  ;;  %v918_v29 = vmul.f32 %v914_v26, %v902_v25  ;;  %v912_v31 = vadd.f32 1.0, %v2195_v22  ;;  %1486 = vperm.xlu0 %2130, %v2273_v0   ;;  %v366_v0 = vld [vmem:[%s2540_s1 + $0x10] sm:$0xff] }
  0xa5   : > { %v913_v33 = vadd.f32 1.0, %v2197_v28  ;;  %v919_v44 = vmul.f32 %v915_v34, %v903_v37 }
  0xa6   : > { %v916_v35 = vmul.f32 %v912_v31, %v900_v30  ;;  %1942 = vmatmul.mubr.msk.f32.vlgmr.msra.gmra.mrb[0].mxu1 %vm372_vm0, %v365_v32 }
  0xa7   : > { %1491 = vperm.xlu1 %2131, %v2282_v3   ;;  %v917_v42 = vmul.f32 %v913_v33, %v901_v36  ;;  %v367_v3 = vld [vmem:[%s2540_s1 + $0x18] sm:$0xff]  ;;  %1944 = vmatprep.mubr.msk.f32.mxu1 %vm372_vm0, %v366_v0  ;;  %v2157_v54 = vpack.i.bf16 %v919_v44, %v918_v29 }
  0xa8   : > { %v2342_v39 = vpack.c.bf16 %v918_v29, %v916_v35  ;;  %2143 = vrot.lane.b32.xlu0 %v2132_v21, %s2220_s22 }
  0xa9   : > { %v2199_v41 = vpop.eup %2198  ;;  %v2152_v51 = vpack.i.bf16 %v917_v42, %v916_v35 }
  0xaa   : > { %v2201_v43 = vpop.eup %2200  ;;  %v1215_v46 = vadd.f32 1.0, %v2199_v41  ;;  %2044 = vmatprep.subr.bf16.mxu0 %v2342_v39  ;;  %1945 = vmatmul.mubr.msk.f32.gmra.mrb[2].mxu1 %vm372_vm0, %v367_v3 }
  0xab   : > { %v2203_v40 = vpop.eup %2202  ;;  %2046 = vmatpush3.bf16.msra.mxu0 %v2342_v39  ;;  %2148 = vrot.lane.b32.xlu1 %v2137_v27, %s2220_s22  ;;  %v1216_v52 = vadd.f32 1.0, %v2201_v43 }
  0xac   : > { %v2205_v38 = vpop.eup %2204  ;;  %v1219_v47 = vmul.f32 %v1215_v46, %v1203_v45  ;;  %v1213_v49 = vadd.f32 1.0, %v2203_v40  ;;  %2153 = vrot.lane.b32.xlu0 %v2152_v51, %s2220_s22  ;;  %1951 = vmatprep.mubr.msk.f32.mxu1 %vm372_vm0, %v1802_v55  ;;  %v1811_v40 = vld [vmem:[%s2540_s1 + $0xc8] sm:$0xff]  ;;  %v1812_v51 = vld [vmem:[%s2540_s1 + $0xd0] sm:$0xff]  ;;  %v1813_v55 = vld [vmem:[%s2540_s1 + $0xd8] sm:$0xff] }
  0xad   : > { %v1214_v50 = vadd.f32 1.0, %v2205_v38  ;;  %v1220_v60 = vmul.f32 %v1216_v52, %v1204_v57 }
  0xae   : > { %v1217_v53 = vmul.f32 %v1213_v49, %v1201_v48  ;;  %1982 = vmatmul.mubr.msk.f32.vlgmr.msra.gmra.mrb[0].mxu0 %vm372_vm0, %v1831_v62 }
  0xaf   : > { %2158 = vrot.lane.b32.xlu1 %v2157_v54, %s2220_s22  ;;  %v1218_v59 = vmul.f32 %v1214_v50, %v1202_v56  ;;  %v2177_v1 = vpack.i.bf16 %v1220_v60, %v1219_v47  ;;  %1991 = vmatprep.mubr.msk.f32.mxu0 %vm372_vm0, %v1838_v2 }
  0xb0   : > { %v2360_v58 = vpack.c.bf16 %v1219_v47, %v1217_v53  ;;  %2163 = vrot.lane.b32.xlu0 %v2132_v21, %s2221_s8  ;;  %v1480_v21 = vmul.f32 %v1866_v18, %v1473_v4 }
  0xb1   : > { %v2172_v63 = vpack.i.bf16 %v1218_v59, %v1217_v53 }
  0xb3   : > { %2168 = vrot.lane.b32.xlu1 %v2137_v27, %s2221_s8 }
  0xb4   : > { %2173 = vrot.lane.b32.xlu0 %v2172_v63, %s2219_s17 }
  0xb7   : > { %2178 = vrot.lane.b32.xlu1 %v2177_v1, %s2219_s17  ;;  %v1839_v1 = vld [vmem:[%s2540_s1 + $0xe8] sm:$0xff]  ;;  %s303_s17 = scalar_lea.vmem %s2546_s7, %s2511_s29 }
 0x112   : > { %v2134_v6 = vpop.permute.xlu0 %2133 }
 0x113   : > { %v2136_v7 = vunpack.i.h.bf16 %v2134_v6  ;;  %v2135_v8 = vunpack.i.l.bf16 %v2134_v6  ;;  %v1818_v6 = vld [vmem:[%s2540_s1 + $0x100] sm:$0xff] }
 0x115   : > { %v2139_v9 = vpop.permute.xlu1 %2138  ;;  %v500_v14 = vsel %vm499_vm1, %v2135_v8, %v2136_v7  ;;  %v1840_v7 = vld [vmem:[%s2540_s1 + $0xf0] sm:$0xff] }
 0x116   : > { %v2141_v10 = vunpack.i.h.bf16 %v2139_v9  ;;  %v2140_v13 = vunpack.i.l.bf16 %v2139_v9  ;;  %v1819_v9 = vld [vmem:[%s2540_s1 + $0x108] sm:$0xff] }
 0x118   : > { %v501_v15 = vsel %vm499_vm1, %v2140_v13, %v2141_v10 }
 0x119   : > { %v2031_v11 = vpack.c.bf16 %v501_v15, %v500_v14  ;;  %v1841_v14 = vld [vmem:[%s2540_s1 + $0xf8] sm:$0xff] }
 0x11b   : > { %2032 = vmatprep.subr.bf16.mxu1 %v2031_v11 }
 0x11c   : > { %2034 = vmatpush3.bf16.msra.mxu1 %v2031_v11 }
 0x11f   : > { %1952 = vmatmul.mubr.msk.f32.vlgmr.msra.gmra.mrb[0].mxu1 %vm372_vm0, %v1803_v16 }
 0x120   : > { %1954 = vmatprep.mubr.msk.f32.mxu1 %vm372_vm0, %v1804_v17  ;;  %v1820_v17 = vld [vmem:[%s2540_s1 + $0x110] sm:$0xff] }
 0x123   : > { %1955 = vmatmul.mubr.msk.f32.gmra.mrb[2].mxu1 %vm372_vm0, %v1805_v12  ;;  %v1487_v24 = vpop.permute.xlu0 %1486 }
 0x124   : > { %1961 = vmatprep.mubr.msk.f32.mxu1 %vm372_vm0, %v1810_v19  ;;  %v2396_v25 = vadd.f32 %v1487_v24, %v1480_v21  ;;  %v1821_v19 = vld [vmem:[%s2540_s1 + $0x118] sm:$0xff]  ;;  %v1832_v21 = vld [vmem:[%s2540_s1 + $0x30] sm:$0xff] }
 0x126   : > { %v1492_v26 = vpop.permute.xlu1 %1491  ;;  %v1498_v29 = vmul.f32 0.70710677, %v2396_v25  ;;  %v1496_v12 = vmul.f32 0.5, %v2396_v25  ;;  %v1853_v25 = vld [vmem:[%s2540_s1 + $0x78] sm:$0xff] }
 0x127   : > { %v2398_v27 = vadd.f32 %v1492_v26, %v1481_v23  ;;  %v2144_v28 = vpop.permute.xlu0 %2143  ;;  %v1858_v26 = vld [vmem:[%s2540_s1 + $0xa0] sm:$0xff] }
 0x128   : > { %v2146_v30 = vunpack.i.h.bf16 %v2144_v28  ;;  %v2145_v31 = vunpack.i.l.bf16 %v2144_v28  ;;  %v1860_v28 = vld [vmem:[%s2540_s1 + $0xb0] sm:$0xff] }
 0x129   : > { %v1499_v22 = vmul.f32 0.70710677, %v2398_v27  ;;  %v1497_v16 = vmul.f32 0.5, %v2398_v27  ;;  %v1833_v27 = vld [vmem:[%s2540_s1 + $0x38] sm:$0xff] }
 0x12a   : > { %v2149_v32 = vpop.permute.xlu1 %2148  ;;  %v627_v36 = vsel %vm626_vm2, %v2145_v31, %v2146_v30  ;;  %v1868_v30 = vld [vmem:[%s2540_s1 + $0x80] sm:$0xff]  ;;  %v1869_v31 = vld [vmem:[%s2540_s1 + $0x88] sm:$0xff] }
 0x12b   : > { %v2151_v33 = vunpack.i.h.bf16 %v2149_v32  ;;  %v2150_v34 = vunpack.i.l.bf16 %v2149_v32  ;;  %2206 = verf.f32 %v1499_v22  ;;  %v2154_v35 = vpop.permute.xlu0 %2153  ;;  %v1859_v22 = vld [vmem:[%s2540_s1 + $0xa8] sm:$0xff]  ;;  %v1870_v32 = vld [vmem:[%s2540_s1 + $0x90] sm:$0xff] }
 0x12c   : > { %2208 = verf.f32 %v1498_v29  ;;  %v2156_v41 = vunpack.i.h.bf16 %v2154_v35  ;;  %v2155_v42 = vunpack.i.l.bf16 %v2154_v35  ;;  %v1861_v29 = vld [vmem:[%s2540_s1 + $0xb8] sm:$0xff] }
 0x12d   : > { %v628_v37 = vsel %vm626_vm2, %v2150_v34, %v2151_v33  ;;  %v1871_v33 = vld [vmem:[%s2540_s1 + $0x98] sm:$0xff] }
 0x12e   : > { %v2159_v43 = vpop.permute.xlu1 %2158  ;;  %v2035_v44 = vpack.c.bf16 %v628_v37, %v627_v36  ;;  %v1055_v3 = vsel %vm626_vm2, %v2155_v42, %v2156_v41  ;;  %v1876_v42 = vld [vmem:[%s2541_s2] ss:$0 sm:$0xff] }
 0x12f   : > { %v2161_v45 = vunpack.i.h.bf16 %v2159_v43  ;;  %v2160_v46 = vunpack.i.l.bf16 %v2159_v43  ;;  %v2164_v0 = vpop.permute.xlu0 %2163 }
 0x130   : > { %2036 = vmatprep.subr.bf16.mxu1 %v2035_v44  ;;  %v2166_v47 = vunpack.i.h.bf16 %v2164_v0  ;;  %v2165_v48 = vunpack.i.l.bf16 %v2164_v0 }
 0x131   : > { %2038 = vmatpush3.bf16.msra.mxu1 %v2035_v44  ;;  %v1056_v38 = vsel %vm626_vm2, %v2160_v46, %v2161_v45 }
 0x132   : > { %v2169_v49 = vpop.permute.xlu1 %2168  ;;  %v2047_v50 = vpack.c.bf16 %v1056_v38, %v1055_v3  ;;  %v754_v56 = vsel %vm753_vm3, %v2165_v48, %v2166_v47 }
 0x133   : > { %v2171_v52 = vunpack.i.h.bf16 %v2169_v49  ;;  %v2170_v53 = vunpack.i.l.bf16 %v2169_v49  ;;  %v2174_v54 = vpop.permute.xlu0 %2173 }
 0x134   : > { %1962 = vmatmul.mubr.msk.f32.vlgmr.msra.gmra.mrb[0].mxu1 %vm372_vm0, %v1811_v40  ;;  %2048 = vmatprep.subr.bf16.mxu0 %v2047_v50  ;;  %v2176_v60 = vunpack.i.h.bf16 %v2174_v54  ;;  %v2175_v61 = vunpack.i.l.bf16 %v2174_v54 }
 0x135   : > { %2050 = vmatpush3.bf16.msra.mxu0 %v2047_v50  ;;  %1964 = vmatprep.mubr.msk.f32.mxu1 %vm372_vm0, %v1812_v51  ;;  %v755_v57 = vsel %vm753_vm3, %v2170_v53, %v2171_v52  ;;  %v2207_v59 = vpop.eup %2206 }
 0x136   : > { %v2179_v62 = vpop.permute.xlu1 %2178  ;;  %2052 = vmatprep.subr.bf16.mxu0 %v2360_v58  ;;  %v2039_v63 = vpack.c.bf16 %v755_v57, %v754_v56  ;;  %v2209_v5 = vpop.eup %2208  ;;  %v1503_v8 = vadd.f32 1.0, %v2207_v59  ;;  %v1356_v10 = vsel %vm499_vm1, %v2175_v61, %v2176_v60 }
 0x137   : > { %v2181_v2 = vunpack.i.h.bf16 %v2179_v62  ;;  %v2180_v4 = vunpack.i.l.bf16 %v2179_v62  ;;  %v1502_v11 = vadd.f32 1.0, %v2209_v5 }
 0x138   : > { %1965 = vmatmul.mubr.msk.f32.gmra.mrb[2].mxu1 %vm372_vm0, %v1813_v55  ;;  %2040 = vmatprep.subr.bf16.mxu1 %v2039_v63  ;;  %v1505_v18 = vmul.f32 %v1503_v8, %v1497_v16 }
 0x139   : > { %1992 = vmatmul.mubr.msk.f32.vlgmr.msra.gmra.mrb[0].mxu0 %vm372_vm0, %v1839_v1  ;;  %2042 = vmatpush3.bf16.msra.mxu1 %v2039_v63  ;;  %v1357_v13 = vsel %vm499_vm1, %v2180_v4, %v2181_v2  ;;  %v1504_v23 = vmul.f32 %v1502_v11, %v1496_v12 }
 0x13a   : > { %2054 = vmatpush3.bf16.msra.mxu0 %v2360_v58  ;;  %2063 = vmatprep.subr.bf16.mxu1 %v2342_v39  ;;  %v2055_v15 = vpack.c.bf16 %v1357_v13, %v1356_v10  ;;  %v1850_v58 = vld [vmem:[%s2540_s1 + $0x60] sm:$0xff] }
 0x13b   : > { %1971 = vmatprep.mubr.msk.f32.mxu1 %vm372_vm0, %v1818_v6  ;;  %1994 = vmatprep.mubr.msk.f32.mxu0 %vm372_vm0, %v1840_v7  ;;  %v2059_v24 = vpack.c.bf16 %v1505_v18, %v1504_v23 }
 0x13c   : > { %1972 = vmatmul.mubr.msk.f32.vlgmr.msra.gmra.mrb[0].mxu1 %vm372_vm0, %v1819_v9  ;;  %2056 = vmatprep.subr.bf16.mxu0 %v2055_v15 }
 0x13d   : > { %1995 = vmatmul.mubr.msk.f32.gmra.mrb[2].mxu0 %vm372_vm0, %v1841_v14  ;;  %2064 = vmatpush3.bf16.msra.mxu1 %v2342_v39  ;;  %v1852_v39 = vld [vmem:[%s2540_s1 + $0x70] sm:$0xff] }
 0x13e   : > { %1974 = vmatprep.mubr.msk.f32.mxu1 %vm372_vm0, %v1820_v17  ;;  %2001 = vmatprep.mubr.msk.f32.mxu0 %vm372_vm0, %v1850_v58 }
 0x140   : > { %1975 = vmatmul.mubr.msk.f32.gmra.mrb[2].mxu1 %vm372_vm0, %v1821_v19 }
 0x141   : > { %2002 = vmatmul.mubr.msk.f32.vlgmr.msra.gmra.mrb[0].mxu0 %vm372_vm0, %v1851_v20  ;;  %1984 = vmatprep.mubr.msk.f32.mxu1 %vm372_vm0, %v1832_v21 }
 0x142   : > { %2058 = vmatpush3.bf16.msra.mxu0 %v2055_v15  ;;  %2004 = vmatprep.mubr.msk.f32.mxu0 %vm372_vm0, %v1852_v39 }
 0x143   : > { %2060 = vmatprep.subr.bf16.mxu0 %v2059_v24 }
 0x145   : > { %2005 = vmatmul.mubr.msk.f32.gmra.mrb[2].mxu0 %vm372_vm0, %v1853_v25 }
 0x146   : > { %2011 = vmatprep.mubr.msk.f32.mxu0 %vm372_vm0, %v1858_v26 }
 0x148   : > { %1985 = vmatmul.mubr.msk.f32.vlgmr.msra.gmra.mrb[2].mxu1 %vm372_vm0, %v1833_v27 }
 0x149   : > { %2012 = vmatmul.mubr.msk.f32.vlgmr.msra.gmra.mrb[0].mxu0 %vm372_vm0, %v1859_v22 }
 0x14a   : > { %2062 = vmatpush3.bf16.msra.mxu0 %v2059_v24  ;;  %2014 = vmatprep.mubr.msk.f32.mxu0 %vm372_vm0, %v1860_v28 }
 0x14d   : > { %2015 = vmatmul.mubr.msk.f32.gmra.mrb[2].mxu0 %vm372_vm0, %v1861_v29 }
 0x14e   : > { %2021 = vmatprep.mubr.msk.f32.mxu0 %vm372_vm0, %v1868_v30 }
 0x151   : > { %2022 = vmatmul.mubr.msk.f32.vlgmr.msra.gmra.mrb[0].mxu0 %vm372_vm0, %v1869_v31 }
 0x152   : > { %2024 = vmatprep.mubr.msk.f32.mxu0 %vm372_vm0, %v1870_v32 }
 0x155   : > { %2025 = vmatmul.mubr.msk.f32.gmra.mrb[2].mxu0 %vm372_vm0, %v1871_v33 }
 0x20f   : > { %v1973_v34 = vpop.f32.mrb[0].mxu1 }
 0x210   : > { %v836_v35 = vpop.f32.mrb[1].mxu1 }
 0x21b   : > { %v1986_v36 = vpop.f32.mrb[2].mxu1 }
 0x21c   : > { %v1017_v37 = vpop.f32.mrb[3].mxu1 }
 0x224   : > { %v2023_v41 = vpop.f32.mrb[0].mxu0 }
 0x225   : > { %v2070_v43 = vadd.f32 %v2023_v41, %v1973_v34  ;;  %v1593_v44 = vpop.f32.mrb[1].mxu0 }
 0x226   : > { %v2076_v45 = vadd.f32 %v1593_v44, %v836_v35 }
 0x227   : > { %1617 = vst [vmem:[%s293_s9 + $0x8] sm:$0xff] %v2070_v43  ;;  %v1632_v46 = vmul.f32 %v2070_v43, %v1876_v42 }
 0x228   : > { %1616 = vst [vmem:[%s293_s9] sm:$0xff] %v2076_v45  ;;  %v2026_v0 = vpop.f32.mrb[2].mxu0  ;;  %v1631_v40 = vmul.f32 %v2076_v45, %v1876_v42 }
 0x229   : > { %v2082_v3 = vadd.f32 %v2026_v0, %v1986_v36  ;;  %v1603_v38 = vpop.f32.mrb[3].mxu0  ;;  %1637 = vadd.xlane.f32.xlu1 %v1632_v46  ;;  %v1649_v49 = vmul.f32 %v2070_v43, %v1632_v46 }
 0x22a   : > { %v2088_v47 = vadd.f32 %v1603_v38, %v1017_v37  ;;  %1635 = vadd.xlane.f32.xlu0 %v1631_v40  ;;  %v1648_v48 = vmul.f32 %v2076_v45, %v1631_v40 }
 0x22b   : > { %1619 = vst [vmem:[%s293_s9 + $0x18] sm:$0xff] %v2082_v3  ;;  %v1634_v52 = vmul.f32 %v2082_v3, %v1876_v42 }
 0x22c   : > { %1618 = vst [vmem:[%s293_s9 + $0x10] sm:$0xff] %v2088_v47  ;;  %v1633_v50 = vmul.f32 %v2088_v47, %v1876_v42 }
 0x22d   : > { %1652 = vadd.xlane.f32.xlu1 %v1648_v48  ;;  %v1651_v53 = vmul.f32 %v2082_v3, %v1634_v52 }
 0x22e   : > { %1654 = vadd.xlane.f32.xlu0 %v1649_v49  ;;  %v1650_v51 = vmul.f32 %v2088_v47, %v1633_v50 }
 0x231   : > { %1656 = vadd.xlane.f32.xlu1 %v1650_v51 }
 0x232   : > { %1641 = vadd.xlane.f32.xlu0 %v1634_v52 }
 0x236   : > { %1639 = vadd.xlane.f32.xlu0 %v1633_v50 }
 0x23a   : > { %1658 = vadd.xlane.f32.xlu0 %v1651_v53 }
 0x2b6   : > { %v1638_v54 = vpop.xlane.xlu1 %1637 }
 0x2b7   : > { %1645 = vst.msk [vmem:[%s298_s13 + $0x8] sm:$0xff] %vm1643_vm4, %v1638_v54  ;;  %v1636_v55 = vpop.xlane.xlu0 %1635 }
 0x2b8   : > { %1644 = vst.msk [vmem:[%s298_s13] sm:$0xff] %vm1643_vm4, %v1636_v55 }
 0x2ba   : > { %v1653_v56 = vpop.xlane.xlu1 %1652 }
 0x2bb   : > { %1660 = vst.msk [vmem:[%s303_s17] sm:$0xff] %vm1643_vm4, %v1653_v56  ;;  %v1655_v57 = vpop.xlane.xlu0 %1654 }
 0x2bc   : > { %1661 = vst.msk [vmem:[%s303_s17 + $0x8] sm:$0xff] %vm1643_vm4, %v1655_v57 }
 0x2be   : > { %v1657_v59 = vpop.xlane.xlu1 %1656 }
 0x2bf   : > { %1662 = vst.msk [vmem:[%s303_s17 + $0x10] sm:$0xff] %vm1643_vm4, %v1657_v59  ;;  %v1642_v60 = vpop.xlane.xlu0 %1641 }
 0x2c0   : > { %1647 = vst.msk [vmem:[%s298_s13 + $0x18] sm:$0xff] %vm1643_vm4, %v1642_v60 }
 0x2c3   : > { %v1640_v61 = vpop.xlane.xlu0 %1639 }
 0x2c4   : > { %1646 = vst.msk [vmem:[%s298_s13 + $0x10] sm:$0xff] %vm1643_vm4, %v1640_v61 }
 0x2c7   : > { %v1659_v62 = vpop.xlane.xlu0 %1658 }
 0x2c8   : > { %1663 = vst.msk [vmem:[%s303_s17 + $0x18] sm:$0xff] %vm1643_vm4, %v1659_v62 }
 0x2c9 PF: > { %s18_s24 = sadd.s32 1, %s2216_s24  }
 0x2ca   : > { %p15_p4 = scmp.ge.s32.totalorder %s18_s24, 4  }
 0x2cc   :  { %17 = sbr.rel (!%p15_p4) target bundleno = 1 (0x1), region = 105 }

</bundles_post_ra>
